<compile_context>
chip_gen: v7x
topology: tpu7x:2x2x1
jax: 0.10.0
libtpu: 0.0.40
codegen_flags: <defaults>
</compile_context>

<pallas_src>
import functools

import jax
import jax.numpy as jnp
from jax.experimental import pallas as pl
from jax.experimental.pallas import tpu as pltpu


# ----------------------------------------------------------------------------
# Pallas kernel: one (batch row, head) per grid step; heads accumulate into a
# VMEM scratch; residual + LayerNorm applied on the last head step.
# ----------------------------------------------------------------------------
def mha_kernel(q_ref, k_ref, v_ref, gst_ref, wvft_ref, scat_ref,
               res_ref, gamma_ref, beta_ref, o_ref, acc_ref, *, eps):
    h = pl.program_id(1)

    @pl.when(h == 0)
    def _init():
        acc_ref[...] = jnp.zeros_like(acc_ref)

    q_row = q_ref[0, 0]            # (1, D)  q_rep[m] = query[b, h*dph + m//H]
    k_col = k_ref[0, 0]            # (D, 1)  k_rep[n] = key  [b, h*dph + n//H]
    v_col = v_ref[0, 0]            # (D, 1)  v_rep[n] = value[b, h*dph + n//H]

    d = q_row.shape[-1]

    # Scores in transposed layout (n on sublanes, m on lanes):
    #   a[n, m] = k_rep[n] * q_rep[m] * (G[m%H, n%H] * scale)      -- pure VPU
    a = (k_col * gst_ref[...]) * q_row                             # (D, D)

    # torch Softmax(dim=2): normalize over the query axis m (lane reductions).
    a_max = jnp.max(a, axis=-1, keepdims=True)                     # (D, 1)
    e = jnp.exp(a - a_max)                                         # (D, D)  EUP
    z = jnp.sum(e, axis=-1, keepdims=True)                         # (D, 1)
    v_sc = v_col * pl.reciprocal(z, approx=True)                   # (D, 1)  z >= 1

    # tmp[m] = sum_n softmax[n,m] * v_rep[n] * WVF[n%H, m%H]
    # (attn @ v followed by linear_final, folded through WVF).
    t = e * (v_sc * wvft_ref[...])                                 # (D, D)
    part = jnp.sum(t.reshape(d // 8, 8, d), axis=0)                # (8, D) partial sums

    # Scatter this head's contribution into the model_dim axis with a constant
    # 0/1 matrix (well-shaped (8,D)x(D,D) MXU matmul), finish the n-reduction,
    # and accumulate across heads.
    scat = jnp.dot(part, scat_ref[0], preferred_element_type=jnp.float32)  # (8, D)
    acc_ref[...] += jnp.sum(scat, axis=0, keepdims=True)           # (1, D)

    @pl.when(h == pl.num_programs(1) - 1)
    def _finalize():
        # output dropout: identity at eval.  Residual + LayerNorm(model_dim).
        x = res_ref[0] + acc_ref[...]                              # (1, D)
        mean = jnp.mean(x, axis=-1, keepdims=True)
        var = jnp.mean((x - mean) * (x - mean), axis=-1, keepdims=True)
        xn = (x - mean) * jax.lax.rsqrt(var + eps)
        o_ref[0] = xn * gamma_ref[...] + beta_ref[...]


# ----------------------------------------------------------------------------
# Wrapper: folds the rank-1 projection weights into constant (D, D) matrices
# and precomputes the replicated per-head scalars (the torch .view() split).
# ----------------------------------------------------------------------------
@functools.partial(jax.jit, static_argnames=("num_heads",))
def multi_head_attention(query, key, value, params, *, num_heads=8):
    """query/key/value: (B, model_dim) float32 -> (B, model_dim) float32."""
    B, d_model = query.shape
    H = num_heads
    dph = d_model // H

    wq, wk, wv, wf = params["wq"], params["wk"], params["wv"], params["wf"]

    # Gram matrices of the rank-1 projections, tiled to lane-dense (D, D).
    g = wq.reshape(H, dph) @ wk.reshape(H, dph).T          # (H, H)
    wvf = wv.reshape(H, dph) @ wf.reshape(H, dph).T        # (H, H)
    gst = jnp.tile(g.T, (dph, dph))                        # gst [n, m] = G  [m%H, n%H]
    wvft = jnp.tile(wvf, (dph, dph))                       # wvft[n, m] = WVF[n%H, m%H]

    # torch: scale = (dim_per_head // num_heads) ** -0.5, applied iff truthy.
    # Folded into the constant score matrix (weight folding, zero runtime cost).
    scale_int = dph // H
    if scale_int:
        gst = gst * (float(scale_int) ** -0.5)

    # Constant per-head scatter matrices SCAT[h][m, i] = (i == h*dph + m//H).
    m_idx = jnp.arange(d_model)
    tgt = jnp.arange(H)[:, None] * dph + (m_idx // H)[None, :]                 # (H, D)
    scats = (m_idx[None, None, :] == tgt[:, :, None]).astype(jnp.float32)      # (H, D, D)

    # Replicated per-head scalars realizing the flat .view() head split.
    def rep(x):                                            # (B, D) -> (B, H, D)
        return jnp.repeat(x.reshape(B, H, dph), H, axis=-1)

    q_rep = rep(query).reshape(B, H, 1, d_model)           # rows     (lane-dense)
    k_rep = rep(key).reshape(B, H, d_model, 1)             # columns  (sublane-dense)
    v_rep = rep(value).reshape(B, H, d_model, 1)           # columns

    kernel = functools.partial(mha_kernel, eps=1e-5)

    out = pl.pallas_call(
        kernel,
        out_shape=jax.ShapeDtypeStruct((B, 1, d_model), jnp.float32),
        grid=(B, H),
        in_specs=[
            pl.BlockSpec((1, 1, 1, d_model), lambda b, h: (b, h, 0, 0)),   # q rows
            pl.BlockSpec((1, 1, d_model, 1), lambda b, h: (b, h, 0, 0)),   # k cols
            pl.BlockSpec((1, 1, d_model, 1), lambda b, h: (b, h, 0, 0)),   # v cols
            pl.BlockSpec((d_model, d_model), lambda b, h: (0, 0)),         # Gs^T
            pl.BlockSpec((d_model, d_model), lambda b, h: (0, 0)),         # WVF^T
            pl.BlockSpec((1, d_model, d_model), lambda b, h: (h, 0, 0)),   # SCAT_h
            pl.BlockSpec((1, 1, d_model), lambda b, h: (b, 0, 0)),         # residual
            pl.BlockSpec((1, d_model), lambda b, h: (0, 0)),               # LN gamma
            pl.BlockSpec((1, d_model), lambda b, h: (0, 0)),               # LN beta
        ],
        out_specs=pl.BlockSpec((1, 1, d_model), lambda b, h: (b, 0, 0)),
        scratch_shapes=[pltpu.VMEM((1, d_model), jnp.float32)],
        compiler_params=pltpu.CompilerParams(
            dimension_semantics=("parallel", "arbitrary")),
    )(q_rep, k_rep, v_rep, gst, wvft, scats,
      query.reshape(B, 1, d_model),
      params["ln_gamma"].reshape(1, d_model),
      params["ln_beta"].reshape(1, d_model))
    return out.reshape(B, d_model)


# ----------------------------------------------------------------------------
# Pure-JAX reference (mirrors the PyTorch forward exactly)
# ----------------------------------------------------------------------------
def mha_reference(query, key, value, params, *, num_heads=8):
    B, d_model = query.shape
    dph = d_model // num_heads
    q = (query[:, :, None] * params["wq"][None, None, :]).reshape(
        B, num_heads, d_model, dph)
    k = (key[:, :, None] * params["wk"][None, None, :]).reshape(
        B, num_heads, d_model, dph)
    v = (value[:, :, None] * params["wv"][None, None, :]).reshape(
        B, num_heads, d_model, dph)
    attn = jnp.einsum('bhmd,bhnd->bhmn', q, k)
    scale_int = dph // num_heads
    if scale_int:
        attn = attn * (float(scale_int) ** -0.5)
    attn = jax.nn.softmax(attn, axis=2)                    # dim=2, as in the spec
    ctx = jnp.einsum('bhmn,bhnd->bhmd', attn, v).reshape(B, d_model, d_model)
    out = jnp.einsum('bij,j->bi', ctx, params["wf"])
    x = query + out
    mean = jnp.mean(x, axis=-1, keepdims=True)
    var = jnp.mean(jnp.square(x - mean), axis=-1, keepdims=True)
    xn = (x - mean) / jnp.sqrt(var + 1e-5)
    return xn * params["ln_gamma"][None, :] + params["ln_beta"][None, :]


# ----------------------------------------------------------------------------
if __name__ == "__main__":
    B, model_dim, num_heads = 2, 256, 8     # module defaults: model_dim=256, 8 heads

    root = jax.random.PRNGKey(0)
    kq, kk, kv, k1, k2, k3, k4 = jax.random.split(root, 7)
    query = jax.random.normal(kq, (B, model_dim), jnp.float32)
    key = jax.random.normal(kk, (B, model_dim), jnp.float32)
    value = jax.random.normal(kv, (B, model_dim), jnp.float32)

    params = dict(
        wq=0.1 * jax.random.normal(k1, (model_dim,), jnp.float32),   # Linear(1, D).weight[:, 0]
        wk=0.1 * jax.random.normal(k2, (model_dim,), jnp.float32),
        wv=0.1 * jax.random.normal(k3, (model_dim,), jnp.float32),
        wf=0.1 * jax.random.normal(k4, (model_dim,), jnp.float32),   # Linear(D, 1).weight[0, :]
        ln_gamma=jnp.ones((model_dim,), jnp.float32),
        ln_beta=jnp.zeros((model_dim,), jnp.float32),
    )

    out = multi_head_attention(query, key, value, params, num_heads=num_heads)
    out = jax.block_until_ready(out)

    ref = mha_reference(query, key, value, params, num_heads=num_heads)

    assert out.shape == (B, model_dim)
    assert bool(jnp.all(jnp.isfinite(out)))
    max_err = float(jnp.max(jnp.abs(out - ref)))
    assert bool(jnp.allclose(out, ref, rtol=5e-2, atol=5e-2)), max_err
    print("KERNEL_OK")
</pallas_src>

<mosaic_0001>
module attributes {stable_mosaic.version = 11 : i64} {
  func.func @mha_kernel(%arg0: i32, %arg1: i32, %arg2: memref<1x1x1x256xf32, #tpu.memory_space<vmem>>, %arg3: memref<1x1x256x1xf32, #tpu.memory_space<vmem>>, %arg4: memref<1x1x256x1xf32, #tpu.memory_space<vmem>>, %arg5: memref<256x256xf32, #tpu.memory_space<vmem>>, %arg6: memref<256x256xf32, #tpu.memory_space<vmem>>, %arg7: memref<1x256x256xf32, #tpu.memory_space<vmem>>, %arg8: memref<1x1x256xf32, #tpu.memory_space<vmem>>, %arg9: memref<1x256xf32, #tpu.memory_space<vmem>>, %arg10: memref<1x256xf32, #tpu.memory_space<vmem>>, %arg11: memref<1x1x256xf32, #tpu.memory_space<vmem>>, %arg12: memref<1x256xf32, #tpu.memory_space<vmem>>) attributes {dimension_semantics = [#tpu.dimension_semantics<parallel>, #tpu.dimension_semantics<arbitrary>], iteration_bounds = array<i64: 2, 8>, scalar_prefetch = 0 : i64, scratch_operands = 1 : i64, tpu.core_type = #tpu.core_type<tc>, window_params = [{transform_indices = @transform_0, window_bounds = array<i64: 1, 1, 1, 256>}, {transform_indices = @transform_1, window_bounds = array<i64: 1, 1, 256, 1>}, {transform_indices = @transform_2, window_bounds = array<i64: 1, 1, 256, 1>}, {pipeline_mode = #tpu.pipeline_mode<synchronous>, transform_indices = @transform_3, window_bounds = array<i64: 256, 256>}, {pipeline_mode = #tpu.pipeline_mode<synchronous>, transform_indices = @transform_4, window_bounds = array<i64: 256, 256>}, {transform_indices = @transform_5, window_bounds = array<i64: 1, 256, 256>}, {transform_indices = @transform_6, window_bounds = array<i64: 1, 1, 256>}, {pipeline_mode = #tpu.pipeline_mode<synchronous>, transform_indices = @transform_7, window_bounds = array<i64: 1, 256>}, {pipeline_mode = #tpu.pipeline_mode<synchronous>, transform_indices = @transform_8, window_bounds = array<i64: 1, 256>}, {transform_indices = @transform_9, window_bounds = array<i64: 1, 1, 256>}]} {
    %c0_i32 = arith.constant 0 : i32
    %0 = arith.cmpi eq, %arg1, %c0_i32 : i32
    %1 = arith.extui %0 : i1 to i32
    %c0_i32_0 = arith.constant 0 : i32
    %2 = arith.cmpi ne, %1, %c0_i32_0 : i32
    scf.if %2 {
      %cst_28 = arith.constant 0.000000e+00 : f32
      %40 = vector.broadcast %cst_28 : f32 to vector<1x256xf32>
      %c0_29 = arith.constant 0 : index
      %c0_30 = arith.constant 0 : index
      %41 = vector.load %arg12[%c0_29, %c0_30] : memref<1x256xf32, #tpu.memory_space<vmem>>, vector<1x256xf32>
      tpu.vector_store %arg12[%c0_29, %c0_30], %40 {strides = array<i32>} : memref<1x256xf32, #tpu.memory_space<vmem>>, vector<1x256xf32>,
    } else {
    }
    %c0 = arith.constant 0 : index
    %c0_1 = arith.constant 0 : index
    %c0_2 = arith.constant 0 : index
    %c0_3 = arith.constant 0 : index
    %3 = vector.load %arg2[%c0, %c0_1, %c0_2, %c0_3] : memref<1x1x1x256xf32, #tpu.memory_space<vmem>>, vector<1x1x1x256xf32>
    %4 = vector.shape_cast %3 : vector<1x1x1x256xf32> to vector<1x256xf32>
    %c0_4 = arith.constant 0 : index
    %c0_5 = arith.constant 0 : index
    %c0_6 = arith.constant 0 : index
    %c0_7 = arith.constant 0 : index
    %5 = vector.load %arg3[%c0_4, %c0_5, %c0_6, %c0_7] : memref<1x1x256x1xf32, #tpu.memory_space<vmem>>, vector<1x1x256x1xf32>
    %6 = vector.shape_cast %5 : vector<1x1x256x1xf32> to vector<256x1xf32>
    %c0_8 = arith.constant 0 : index
    %c0_9 = arith.constant 0 : index
    %c0_10 = arith.constant 0 : index
    %c0_11 = arith.constant 0 : index
    %7 = vector.load %arg4[%c0_8, %c0_9, %c0_10, %c0_11] : memref<1x1x256x1xf32, #tpu.memory_space<vmem>>, vector<1x1x256x1xf32>
    %8 = vector.shape_cast %7 : vector<1x1x256x1xf32> to vector<256x1xf32>
    %c0_12 = arith.constant 0 : index
    %c0_13 = arith.constant 0 : index
    %9 = vector.load %arg5[%c0_12, %c0_13] : memref<256x256xf32, #tpu.memory_space<vmem>>, vector<256x256xf32>
    %10 = vector.broadcast %6 : vector<256x1xf32> to vector<256x256xf32>
    %11 = arith.mulf %10, %9 : vector<256x256xf32>
    %12 = vector.broadcast %4 : vector<1x256xf32> to vector<256x256xf32>
    %13 = arith.mulf %11, %12 : vector<256x256xf32>
    %cst = arith.constant dense<0xFF800000> : vector<256xf32>
    %14 = vector.multi_reduction <maximumf>, %13, %cst [1] : vector<256x256xf32> to vector<256xf32>
    %15 = vector.shape_cast %14 : vector<256xf32> to vector<256x1xf32>
    %16 = vector.broadcast %15 : vector<256x1xf32> to vector<256x256xf32>
    %17 = arith.subf %13, %16 : vector<256x256xf32>
    %18 = math.exp %17 : vector<256x256xf32>
    %cst_14 = arith.constant dense<0.000000e+00> : vector<256xf32>
    %19 = vector.multi_reduction <add>, %18, %cst_14 [1] : vector<256x256xf32> to vector<256xf32>
    %20 = vector.shape_cast %19 : vector<256xf32> to vector<256x1xf32>
    %21 = tpu.reciprocal %20 {approx = true} : vector<256x1xf32> -> vector<256x1xf32>
    %22 = arith.mulf %8, %21 : vector<256x1xf32>
    %c0_15 = arith.constant 0 : index
    %c0_16 = arith.constant 0 : index
    %23 = vector.load %arg6[%c0_15, %c0_16] : memref<256x256xf32, #tpu.memory_space<vmem>>, vector<256x256xf32>
    %24 = vector.broadcast %22 : vector<256x1xf32> to vector<256x256xf32>
    %25 = arith.mulf %24, %23 : vector<256x256xf32>
    %26 = arith.mulf %18, %25 : vector<256x256xf32>
    %27 = vector.shape_cast %26 : vector<256x256xf32> to vector<32x8x256xf32>
    %cst_17 = arith.constant dense<0.000000e+00> : vector<8x256xf32>
    %28 = vector.multi_reduction <add>, %27, %cst_17 [0] : vector<32x8x256xf32> to vector<8x256xf32>
    %c0_18 = arith.constant 0 : index
    %c0_19 = arith.constant 0 : index
    %c0_20 = arith.constant 0 : index
    %29 = vector.load %arg7[%c0_18, %c0_19, %c0_20] : memref<1x256x256xf32, #tpu.memory_space<vmem>>, vector<1x256x256xf32>
    %30 = vector.shape_cast %29 : vector<1x256x256xf32> to vector<256x256xf32>
    %cst_21 = arith.constant dense<0.000000e+00> : vector<8x256xf32>
    %31 = tpu.matmul %28, %30, %cst_21 {dimension_numbers = #tpu.dot_dimension_numbers<[1], [0], [0], [1], [0, 0, 1, 1], [], []>} : vector<8x256xf32>, vector<256x256xf32>, vector<8x256xf32> -> vector<8x256xf32>
    %c0_22 = arith.constant 0 : index
    %c0_23 = arith.constant 0 : index
    %32 = vector.load %arg12[%c0_22, %c0_23] : memref<1x256xf32, #tpu.memory_space<vmem>>, vector<1x256xf32>
    %cst_24 = arith.constant dense<0.000000e+00> : vector<256xf32>
    %33 = vector.multi_reduction <add>, %31, %cst_24 [0] : vector<8x256xf32> to vector<256xf32>
    %34 = vector.shape_cast %33 : vector<256xf32> to vector<1x256xf32>
    %35 = arith.addf %32, %34 : vector<1x256xf32>
    %c0_25 = arith.constant 0 : index
    %c0_26 = arith.constant 0 : index
    %36 = vector.load %arg12[%c0_25, %c0_26] : memref<1x256xf32, #tpu.memory_space<vmem>>, vector<1x256xf32>
    tpu.vector_store %arg12[%c0_25, %c0_26], %35 {strides = array<i32>} : memref<1x256xf32, #tpu.memory_space<vmem>>, vector<1x256xf32>,
    %c7_i32 = arith.constant 7 : i32
    %37 = arith.cmpi eq, %arg1, %c7_i32 : i32
    %38 = arith.extui %37 : i1 to i32
    %c0_i32_27 = arith.constant 0 : i32
    %39 = arith.cmpi ne, %38, %c0_i32_27 : i32
    scf.if %39 {
      %c0_28 = arith.constant 0 : index
      %c0_29 = arith.constant 0 : index
      %c0_30 = arith.constant 0 : index
      %40 = vector.load %arg8[%c0_28, %c0_29, %c0_30] : memref<1x1x256xf32, #tpu.memory_space<vmem>>, vector<1x1x256xf32>
      %41 = vector.shape_cast %40 : vector<1x1x256xf32> to vector<1x256xf32>
      %c0_31 = arith.constant 0 : index
      %c0_32 = arith.constant 0 : index
      %42 = vector.load %arg12[%c0_31, %c0_32] : memref<1x256xf32, #tpu.memory_space<vmem>>, vector<1x256xf32>
      %43 = arith.addf %41, %42 : vector<1x256xf32>
      %cst_33 = arith.constant dense<0.000000e+00> : vector<1xf32>
      %44 = vector.multi_reduction <add>, %43, %cst_33 [1] : vector<1x256xf32> to vector<1xf32>
      %45 = vector.shape_cast %44 : vector<1xf32> to vector<1x1xf32>
      %cst_34 = arith.constant 2.560000e+02 : f32
      %46 = vector.broadcast %cst_34 : f32 to vector<1x1xf32>
      %47 = arith.divf %45, %46 : vector<1x1xf32>
      %48 = vector.broadcast %47 : vector<1x1xf32> to vector<1x256xf32>
      %49 = arith.subf %43, %48 : vector<1x256xf32>
      %50 = vector.broadcast %47 : vector<1x1xf32> to vector<1x256xf32>
      %51 = arith.subf %43, %50 : vector<1x256xf32>
      %52 = arith.mulf %49, %51 : vector<1x256xf32>
      %cst_35 = arith.constant dense<0.000000e+00> : vector<1xf32>
      %53 = vector.multi_reduction <add>, %52, %cst_35 [1] : vector<1x256xf32> to vector<1xf32>
      %54 = vector.shape_cast %53 : vector<1xf32> to vector<1x1xf32>
      %cst_36 = arith.constant 2.560000e+02 : f32
      %55 = vector.broadcast %cst_36 : f32 to vector<1x1xf32>
      %56 = arith.divf %54, %55 : vector<1x1xf32>
      %57 = vector.broadcast %47 : vector<1x1xf32> to vector<1x256xf32>
      %58 = arith.subf %43, %57 : vector<1x256xf32>
      %cst_37 = arith.constant 9.99999974E-6 : f32
      %59 = vector.broadcast %cst_37 : f32 to vector<1x1xf32>
      %60 = arith.addf %56, %59 : vector<1x1xf32>
      %61 = math.rsqrt %60 : vector<1x1xf32>
      %62 = vector.broadcast %61 : vector<1x1xf32> to vector<1x256xf32>
      %63 = arith.mulf %58, %62 : vector<1x256xf32>
      %c0_38 = arith.constant 0 : index
      %c0_39 = arith.constant 0 : index
      %64 = vector.load %arg9[%c0_38, %c0_39] : memref<1x256xf32, #tpu.memory_space<vmem>>, vector<1x256xf32>
      %65 = arith.mulf %63, %64 : vector<1x256xf32>
      %c0_40 = arith.constant 0 : index
      %c0_41 = arith.constant 0 : index
      %66 = vector.load %arg10[%c0_40, %c0_41] : memref<1x256xf32, #tpu.memory_space<vmem>>, vector<1x256xf32>
      %67 = arith.addf %65, %66 : vector<1x256xf32>
      %c0_42 = arith.constant 0 : index
      %c0_43 = arith.constant 0 : index
      %c0_44 = arith.constant 0 : index
      %68 = vector.load %arg11[%c0_42, %c0_43, %c0_44] : memref<1x1x256xf32, #tpu.memory_space<vmem>>, vector<1x1x256xf32>
      %69 = vector.shape_cast %68 : vector<1x1x256xf32> to vector<1x256xf32>
      %70 = vector.shape_cast %67 : vector<1x256xf32> to vector<1x1x256xf32>
      tpu.vector_store %arg11[%c0_42, %c0_43, %c0_44], %70 {strides = array<i32>} : memref<1x1x256xf32, #tpu.memory_space<vmem>>, vector<1x1x256xf32>,
    } else {
    }
    return
  }
  func.func @transform_0(%arg0: i32, %arg1: i32) -> (i32, i32, i32, i32) {
    %c0_i32 = arith.constant 0 : i32
    %c0_i32_0 = arith.constant 0 : i32
    %c0_i32_1 = arith.constant 0 : i32
    return %arg0, %arg1, %c0_i32, %c0_i32_0 : i32, i32, i32, i32
  }
  func.func @transform_1(%arg0: i32, %arg1: i32) -> (i32, i32, i32, i32) {
    %c0_i32 = arith.constant 0 : i32
    %c0_i32_0 = arith.constant 0 : i32
    %c0_i32_1 = arith.constant 0 : i32
    return %arg0, %arg1, %c0_i32, %c0_i32_0 : i32, i32, i32, i32
  }
  func.func @transform_2(%arg0: i32, %arg1: i32) -> (i32, i32, i32, i32) {
    %c0_i32 = arith.constant 0 : i32
    %c0_i32_0 = arith.constant 0 : i32
    %c0_i32_1 = arith.constant 0 : i32
    return %arg0, %arg1, %c0_i32, %c0_i32_0 : i32, i32, i32, i32
  }
  func.func @transform_3(%arg0: i32, %arg1: i32) -> (i32, i32) {
    %c0_i32 = arith.constant 0 : i32
    %c0_i32_0 = arith.constant 0 : i32
    %c0_i32_1 = arith.constant 0 : i32
    return %c0_i32, %c0_i32_0 : i32, i32
  }
  func.func @transform_4(%arg0: i32, %arg1: i32) -> (i32, i32) {
    %c0_i32 = arith.constant 0 : i32
    %c0_i32_0 = arith.constant 0 : i32
    %c0_i32_1 = arith.constant 0 : i32
    return %c0_i32, %c0_i32_0 : i32, i32
  }
  func.func @transform_5(%arg0: i32, %arg1: i32) -> (i32, i32, i32) {
    %c0_i32 = arith.constant 0 : i32
    %c0_i32_0 = arith.constant 0 : i32
    %c0_i32_1 = arith.constant 0 : i32
    return %arg1, %c0_i32, %c0_i32_0 : i32, i32, i32
  }
  func.func @transform_6(%arg0: i32, %arg1: i32) -> (i32, i32, i32) {
    %c0_i32 = arith.constant 0 : i32
    %c0_i32_0 = arith.constant 0 : i32
    %c0_i32_1 = arith.constant 0 : i32
    return %arg0, %c0_i32, %c0_i32_0 : i32, i32, i32
  }
  func.func @transform_7(%arg0: i32, %arg1: i32) -> (i32, i32) {
    %c0_i32 = arith.constant 0 : i32
    %c0_i32_0 = arith.constant 0 : i32
    %c0_i32_1 = arith.constant 0 : i32
    return %c0_i32, %c0_i32_0 : i32, i32
  }
  func.func @transform_8(%arg0: i32, %arg1: i32) -> (i32, i32) {
    %c0_i32 = arith.constant 0 : i32
    %c0_i32_0 = arith.constant 0 : i32
    %c0_i32_1 = arith.constant 0 : i32
    return %c0_i32, %c0_i32_0 : i32, i32
  }
  func.func @transform_9(%arg0: i32, %arg1: i32) -> (i32, i32, i32) {
    %c0_i32 = arith.constant 0 : i32
    %c0_i32_0 = arith.constant 0 : i32
    %c0_i32_1 = arith.constant 0 : i32
    return %arg0, %c0_i32, %c0_i32_0 : i32, i32, i32
  }
}

</mosaic_0001>

<bundles_post_ra>
// kernel: multi_head_attention.1
= control target key start
LH: loop header
LB: loop body
LE: loop exit
PB: predicated region body
PF: predicated region fallthrough
CT: control target
= control target key end

     0   :  { %s2549_s30 = smov 0   ;;  %s2551_s10 = smov 0   ;;  %s3763_s0 = inlined_call_operand.vmem [shape: f32[2,8,1,256], index: 0, kind: input, shape index: {}]   ;;  %s3764_s1 = inlined_call_operand.vmem [shape: f32[2,8,256,1], index: 1, kind: input, shape index: {}]   ;;  %s3765_s2 = inlined_call_operand.vmem [shape: f32[2,8,256,1], index: 2, kind: input, shape index: {}]   ;;  %s3766_s3 = inlined_call_operand.vmem [shape: f32[256,256], index: 3, kind: input, shape index: {}]   ;;  %s3767_s4 = inlined_call_operand.vmem [shape: f32[256,256], index: 4, kind: input, shape index: {}]   ;;  %s3768_s5 = inlined_call_operand.vmem [shape: f32[8,256,256], index: 5, kind: input, shape index: {}]   ;;  %s3769_s6 = inlined_call_operand.vmem [shape: f32[2,1,256], index: 6, kind: input, shape index: {}]   ;;  %s3770_s7 = inlined_call_operand.vmem [shape: f32[1,256], index: 7, kind: input, shape index: {}]   ;;  %s3771_s8 = inlined_call_operand.vmem [shape: f32[1,256], index: 8, kind: input, shape index: {}]   ;;  %s3772_s9 = inlined_call_operand.vmem [shape: f32[2,1,256], index: 9, kind: output, shape index: {}]  }
   0x1   :  { %s2553_s11 = smov 0   ;;  %s2555_s12 = smov 0  }
   0x2   :  { %s2557_s13 = smov 0  }
   0x3 LB: > { %3816 = sst [smem:[#allocation3_spill]] %s2486_s11  ;;  %s28_s14 = sadd.s32 1, %s2486_s11  ;;  %s2494_s13 = sphi %s2557_s13, %s19_s13   ;;  %s2490_s12 = sphi %s2555_s12, %s3902_s12   ;;  %s2486_s11 = sphi %s2553_s11, %s3901_s11   ;;  %s2482_s10 = sphi %s2551_s10, %s3900_s10   ;;  %s2478_s30 = sphi %s2549_s30, %s3899_s30  }
   0x4   : > { %3817 = sst [smem:[#allocation4_spill]] %s2490_s12  ;;  %s31_s15 = sadd.s32 1, %s2490_s12 }
   0x5   : > { %3818 = sst [smem:[#allocation5_spill]] %s2494_s13  ;;  %p29_p0 = scmp.ge.s32.totalorder %s28_s14, 8 }
   0x6   : > { %p2135_p1 = scmp.ge.s32.totalorder %s2494_s13, 1  ;;  %p355_p2 = scmp.lt.s32.totalorder %s2494_s13, 17 }
   0x7   : > { %s3904_s14 = smov (%p29_p0, %s28_s14), 0  ;;  %s3906_s15 = smov (!%p29_p0, %s31_s15), %s2490_s12 }
   0x8   : > { %3819 = sst [smem:[#allocation6_spill]] %s3904_s14  ;;  %p356_p3 = pnand %p2135_p1, %p355_p2 }
   0x9   : > { %p33_p4 = scmp.ge.s32.totalorder %s3906_s15, 2 }
   0xa   : > { %359 = sbr.rel (%p356_p3) target bundleno = 1258 (0x4ea), region = 56 }
   0xb   : > { %s3908_s15 = smov (%p33_p4, %s3906_s15), 0 }
   0xc   : > { %3820 = sst [smem:[#allocation7_spill]] %s3908_s15 }
  0x11   : > { %p420_p5 = scmp.lt.s32.totalorder %s2482_s10, 1  ;;  %p422_p6 = scmp.lt.s32.totalorder %s2478_s30, 7 }
  0x12   : > { %p2148_p7 = scmp.ne.s32.totalorder %s2478_s30, 0 }
  0x13   : > { %s3910_s10 = smov (!%p420_p5, %s2482_s10), 1  ;;  %v463_v0 = vlaneseq (!%p2148_p7)  ;;  %v2496_v1 = vmov (!%p2148_p7), 0.0  }
  0x14   : > { %s423_s16 = scalar_select %p422_p6, %s2478_s30, 7 }
  0x15   : > { %s2137_s17 = sshll.u32 %s3910_s10, 4  ;;  %s2139_s18 = sshll.u32 %s3910_s10, 8  ;;  %vm465_vm0 = vcmp.lt.s32.totalorder (!%p2148_p7), %v463_v0, 256 }
  0x16   : > { %s2136_s19 = sshll.u32 %s423_s16, 1  ;;  %s2138_s20 = sshll.u32 %s423_s16, 5  ;;  %467 = vst.msk [vmem:[#allocation2] sm:$0x3] (!%p2148_p7), %vm465_vm0, %v2496_v1 }
  0x17   : > { %s2583_s21 = sadd.s32 %s2137_s17, %s2136_s19  ;;  %s434_s22 = sadd.s32 %s2139_s18, %s2138_s20 }
  0x18   : > { %s427_s25 = scalar_lea.vmem %s3763_s0, %s2583_s21  ;;  %s2140_s26 = sshll.u32 %s434_s22, 3 }
  0x19   : > { %s2592_s29 = scalar_lea.vmem %s3764_s1, %s2140_s26  ;;  %s2597_s12 = scalar_lea.vmem %s3765_s2, %s2140_s26 }
  0x1a   : > { %s2152_s11 = sshll.u32 %s423_s16, 9  ;;  %s2146_s17 = sshll.u32 %s3910_s10, 1 }
  0x1b   : > { %s2602_s18 = scalar_lea.vmem %s3768_s5, %s2152_s11  ;;  %s2607_s22 = scalar_lea.vmem %s3769_s6, %s2146_s17 }
  0x1c   : > { %s2612_s28 = scalar_lea.vmem %s3772_s9, %s2146_s17  ;;  %462 = sbr.rel (%p2148_p7) target bundleno = 35 (0x23), region = 60 }
  0x23 PF: > { %v471_v2 = vld [vmem:[%s2592_s29 + $0x10] sm:$0xff]  ;;  %v469_v3 = vld [vmem:[%s2592_s29] sm:$0xff]  ;;  %v2497_v4 = vmov 0   ;;  %v472_v5 = vld [vmem:[%s2592_s29 + $0x18] sm:$0xff]  ;;  %v3776_v35 = vlaneseq  ;;  %p2149_p8 = scmp.ne.s32.totalorder %s2478_s30, 7 }
  0x24   : > { %2261 = vset.pattern.permute.xlu1 %v2497_v4  ;;  %2260 = vset.pattern.permute.xlu0 %v2497_v4  ;;  %v470_v6 = vld [vmem:[%s2592_s29 + $0x8] sm:$0xff]  ;;  %v473_v8 = vld [vmem:[%s2592_s29 + $0x20] sm:$0xff]  ;;  %v476_v9 = vld [vmem:[%s2592_s29 + $0x38] sm:$0xff]  ;;  %vm1948_vm2 = vcmask (!%p2149_p8), 1040384  }
  0x25   : > { %609 = vperm.xlu1 %2261, %v471_v2   ;;  %599 = vperm.xlu0 %2260, %v469_v3   ;;  %v474_v7 = vld [vmem:[%s2592_s29 + $0x28] sm:$0xff]  ;;  %v475_v10 = vld [vmem:[%s2592_s29 + $0x30] sm:$0xff]  ;;  %v477_v12 = vld [vmem:[%s2592_s29 + $0x40] sm:$0xff]  ;;  %v2648_v36 = vshrl.u32 %v3776_v35, 7 }
  0x26   : > { %v478_v11 = vld [vmem:[%s2592_s29 + $0x48] sm:$0xff]  ;;  %v480_v13 = vld [vmem:[%s2592_s29 + $0x58] sm:$0xff]  ;;  %v479_v14 = vld [vmem:[%s2592_s29 + $0x50] sm:$0xff] }
  0x27   : > { %v482_v15 = vld [vmem:[%s2592_s29 + $0x68] sm:$0xff]  ;;  %v481_v16 = vld [vmem:[%s2592_s29 + $0x60] sm:$0xff]  ;;  %v484_v17 = vld [vmem:[%s2592_s29 + $0x78] sm:$0xff]  ;;  %3821 = vst [vmem:[#allocation8_spill] sm:$0xff] %v2648_v36  ;;  %v2651_v37 = vsub.s32 0, %v2648_v36  ;;  %v2654_v38 = vsub.s32 1, %v2648_v36 }
  0x28   : > { %v483_v18 = vld [vmem:[%s2592_s29 + $0x70] sm:$0xff]  ;;  %v486_v19 = vld [vmem:[%s2592_s29 + $0x88] sm:$0xff]  ;;  %v485_v20 = vld [vmem:[%s2592_s29 + $0x80] sm:$0xff] }
  0x29   : > { %614 = vperm.xlu1 %2261, %v472_v5   ;;  %604 = vperm.xlu0 %2260, %v470_v6   ;;  %v488_v21 = vld [vmem:[%s2592_s29 + $0x98] sm:$0xff]  ;;  %v487_v22 = vld [vmem:[%s2592_s29 + $0x90] sm:$0xff]  ;;  %v490_v23 = vld [vmem:[%s2592_s29 + $0xa8] sm:$0xff]  ;;  %3822 = vst [vmem:[#allocation9_spill] sm:$0xff] %v2651_v37 }
  0x2a   : > { %v489_v24 = vld [vmem:[%s2592_s29 + $0xa0] sm:$0xff]  ;;  %v492_v25 = vld [vmem:[%s2592_s29 + $0xb8] sm:$0xff]  ;;  %v491_v26 = vld [vmem:[%s2592_s29 + $0xb0] sm:$0xff]  ;;  %3823 = vst [vmem:[#allocation10_spill] sm:$0xff] %v2654_v38 }
  0x2b   : > { %v494_v27 = vld [vmem:[%s2592_s29 + $0xc8] sm:$0xff]  ;;  %v493_v28 = vld [vmem:[%s2592_s29 + $0xc0] sm:$0xff]  ;;  %v496_v29 = vld [vmem:[%s2592_s29 + $0xd8] sm:$0xff] }
  0x2c   : > { %v495_v30 = vld [vmem:[%s2592_s29 + $0xd0] sm:$0xff]  ;;  %v498_v31 = vld [vmem:[%s2592_s29 + $0xe8] sm:$0xff]  ;;  %v497_v32 = vld [vmem:[%s2592_s29 + $0xe0] sm:$0xff] }
  0x2d   : > { %624 = vperm.xlu1 %2261, %v474_v7   ;;  %619 = vperm.xlu0 %2260, %v473_v8   ;;  %v500_v33 = vld [vmem:[%s2592_s29 + $0xf8] sm:$0xff]  ;;  %v499_v34 = vld [vmem:[%s2592_s29 + $0xf0] sm:$0xff]  ;;  %v468_v39 = vld [vmem:[%s427_s25] sm:$0x3] }
  0x2e   : > { %v537_v40 = vld [vmem:[%s3766_s3 + $0x20] sm:$0xff]  ;;  %v538_v41 = vld [vmem:[%s3766_s3 + $0x28] sm:$0xff]  ;;  %v2674_v44 = vrot.slane %v468_v39, %v2651_v37  ;;  %v2677_v45 = vrot.slane %v468_v39, %v2654_v38  ;;  %v539_v52 = vld [vmem:[%s3766_s3 + $0x30] sm:$0xff] }
  0x2f   : > { %v533_v42 = vld [vmem:[%s3766_s3] sm:$0xff]  ;;  %v534_v43 = vld [vmem:[%s3766_s3 + $0x8] sm:$0xff]  ;;  %v540_v53 = vld [vmem:[%s3766_s3 + $0x38] sm:$0xff] }
  0x30   : > { %v535_v54 = vld [vmem:[%s3766_s3 + $0x10] sm:$0xff]  ;;  %v536_v55 = vld [vmem:[%s3766_s3 + $0x18] sm:$0xff]  ;;  %v541_v4 = vld [vmem:[%s3766_s3 + $0x40] sm:$0xff] }
  0x31   : > { %634 = vperm.xlu1 %2261, %v476_v9   ;;  %629 = vperm.xlu0 %2260, %v475_v10   ;;  %v543_v3 = vld [vmem:[%s3766_s3 + $0x50] sm:$0xff]  ;;  %v542_v5 = vld [vmem:[%s3766_s3 + $0x48] sm:$0xff]  ;;  %v544_v6 = vld [vmem:[%s3766_s3 + $0x58] sm:$0xff] }
  0x32   : > { %v552_v39 = vld [vmem:[%s3766_s3 + $0x98] sm:$0xff]  ;;  %v587_v36 = vld [vmem:[%s3766_s3 + $0x1b0] sm:$0xff] }
  0x35   : > { %644 = vperm.xlu1 %2261, %v478_v11   ;;  %639 = vperm.xlu0 %2260, %v477_v12  }
  0x39   : > { %654 = vperm.xlu1 %2261, %v480_v13   ;;  %649 = vperm.xlu0 %2260, %v479_v14  }
  0x3d   : > { %664 = vperm.xlu1 %2261, %v482_v15   ;;  %659 = vperm.xlu0 %2260, %v481_v16  }
  0x41   : > { %674 = vperm.xlu1 %2261, %v484_v17   ;;  %669 = vperm.xlu0 %2260, %v483_v18  }
  0x45   : > { %684 = vperm.xlu1 %2261, %v486_v19   ;;  %679 = vperm.xlu0 %2260, %v485_v20   ;;  %v545_v19 = vld [vmem:[%s3766_s3 + $0x60] sm:$0xff]  ;;  %v546_v20 = vld [vmem:[%s3766_s3 + $0x68] sm:$0xff] }
  0x49   : > { %694 = vperm.xlu1 %2261, %v488_v21   ;;  %689 = vperm.xlu0 %2260, %v487_v22   ;;  %v547_v21 = vld [vmem:[%s3766_s3 + $0x70] sm:$0xff]  ;;  %v548_v22 = vld [vmem:[%s3766_s3 + $0x78] sm:$0xff] }
  0x4d   : > { %704 = vperm.xlu1 %2261, %v490_v23   ;;  %699 = vperm.xlu0 %2260, %v489_v24  }
  0x51   : > { %714 = vperm.xlu1 %2261, %v492_v25   ;;  %709 = vperm.xlu0 %2260, %v491_v26  }
  0x55   : > { %724 = vperm.xlu1 %2261, %v494_v27   ;;  %719 = vperm.xlu0 %2260, %v493_v28  }
  0x59   : > { %734 = vperm.xlu1 %2261, %v496_v29   ;;  %729 = vperm.xlu0 %2260, %v495_v30   ;;  %v551_v30 = vld [vmem:[%s3766_s3 + $0x90] sm:$0xff] }
  0x5d   : > { %744 = vperm.xlu1 %2261, %v498_v31   ;;  %739 = vperm.xlu0 %2260, %v497_v32  }
  0x61   : > { %754 = vperm.xlu1 %2261, %v500_v33   ;;  %749 = vperm.xlu0 %2260, %v499_v34  }
  0xa4   : > { %v610_v46 = vpop.permute.xlu1 %609  ;;  %v600_v47 = vpop.permute.xlu0 %599 }
  0xa5   : > { %v761_v48 = vmul.f32 %v610_v46, %v537_v40  ;;  %v762_v49 = vmul.f32 %v610_v46, %v538_v41  ;;  %v757_v50 = vmul.f32 %v600_v47, %v533_v42  ;;  %v758_v51 = vmul.f32 %v600_v47, %v534_v43  ;;  %v549_v40 = vld [vmem:[%s3766_s3 + $0x80] sm:$0xff]  ;;  %v550_v41 = vld [vmem:[%s3766_s3 + $0x88] sm:$0xff] }
  0xa7   : > { %v2692_v56 = vmul.f32 %v2674_v44, %v757_v50  ;;  %v2695_v57 = vmul.f32 %v2677_v45, %v758_v51  ;;  %v2698_v60 = vmul.f32 %v2674_v44, %v761_v48  ;;  %v2701_v61 = vmul.f32 %v2677_v45, %v762_v49 }
  0xa8   : > { %v615_v58 = vpop.permute.xlu1 %614  ;;  %v605_v59 = vpop.permute.xlu0 %604 }
  0xa9   : > { %v763_v62 = vmul.f32 %v615_v58, %v539_v52  ;;  %v764_v63 = vmul.f32 %v615_v58, %v540_v53  ;;  %v759_v0 = vmul.f32 %v605_v59, %v535_v54  ;;  %v760_v1 = vmul.f32 %v605_v59, %v536_v55  ;;  %v555_v55 = vld [vmem:[%s3766_s3 + $0xb0] sm:$0xff]  ;;  %v553_v58 = vld [vmem:[%s3766_s3 + $0xa0] sm:$0xff]  ;;  %v554_v59 = vld [vmem:[%s3766_s3 + $0xa8] sm:$0xff] }
  0xaa   : > { %v896_v2 = vmax.f32 %v2692_v56, %v2695_v57  ;;  %v902_v11 = vmax.f32 %v2698_v60, %v2701_v61 }
  0xab   : > { %v2718_v7 = vmul.f32 %v2674_v44, %v759_v0  ;;  %v2721_v8 = vmul.f32 %v2677_v45, %v760_v1  ;;  %v2726_v12 = vmul.f32 %v2674_v44, %v763_v62  ;;  %v2729_v16 = vmul.f32 %v2677_v45, %v764_v63  ;;  %v556_v0 = vld [vmem:[%s3766_s3 + $0xb8] sm:$0xff] }
  0xac   : > { %897 = vmax.xlane.f32.xlu0 %v896_v2  ;;  %v625_v9 = vpop.permute.xlu1 %624  ;;  %v620_v10 = vpop.permute.xlu0 %619 }
  0xad   : > { %v767_v13 = vmul.f32 %v625_v9, %v543_v3  ;;  %v765_v14 = vmul.f32 %v620_v10, %v541_v4  ;;  %v766_v15 = vmul.f32 %v620_v10, %v542_v5  ;;  %v768_v17 = vmul.f32 %v625_v9, %v544_v6 }
  0xae   : > { %v899_v18 = vmax.f32 %v2718_v7, %v2721_v8  ;;  %v905_v29 = vmax.f32 %v2726_v12, %v2729_v16 }
  0xaf   : > { %v2746_v23 = vmul.f32 %v2674_v44, %v765_v14  ;;  %v2749_v24 = vmul.f32 %v2677_v45, %v766_v15  ;;  %v2757_v31 = vmul.f32 %v2674_v44, %v767_v13  ;;  %v2771_v42 = vmul.f32 %v2677_v45, %v768_v17  ;;  %v557_v17 = vld [vmem:[%s3766_s3 + $0xc0] sm:$0xff] }
  0xb0   : > { %900 = vmax.xlane.f32.xlu1 %v899_v18  ;;  %903 = vmax.xlane.f32.xlu0 %v902_v11  ;;  %v635_v25 = vpop.permute.xlu1 %634  ;;  %v630_v26 = vpop.permute.xlu0 %629  ;;  %v558_v18 = vld [vmem:[%s3766_s3 + $0xc8] sm:$0xff] }
  0xb1   : > { %v769_v27 = vmul.f32 %v630_v26, %v545_v19  ;;  %v770_v28 = vmul.f32 %v630_v26, %v546_v20  ;;  %v771_v32 = vmul.f32 %v635_v25, %v547_v21  ;;  %v772_v33 = vmul.f32 %v635_v25, %v548_v22  ;;  %v559_v19 = vld [vmem:[%s3766_s3 + $0xd0] sm:$0xff]  ;;  %v560_v20 = vld [vmem:[%s3766_s3 + $0xd8] sm:$0xff] }
  0xb2   : > { %v908_v34 = vmax.f32 %v2746_v23, %v2749_v24  ;;  %v911_v54 = vmax.f32 %v2757_v31, %v2771_v42 }
  0xb3   : > { %v2774_v43 = vmul.f32 %v2674_v44, %v769_v27  ;;  %v2777_v46 = vmul.f32 %v2677_v45, %v770_v28  ;;  %v2793_v62 = vmul.f32 %v2674_v44, %v771_v32  ;;  %v2796_v63 = vmul.f32 %v2677_v45, %v772_v33 }
  0xb4   : > { %909 = vmax.xlane.f32.xlu1 %v908_v34  ;;  %906 = vmax.xlane.f32.xlu0 %v905_v29  ;;  %v645_v47 = vpop.permute.xlu1 %644  ;;  %v640_v48 = vpop.permute.xlu0 %639 }
  0xb5   : > { %v775_v49 = vmul.f32 %v645_v47, %v551_v30  ;;  %v776_v50 = vmul.f32 %v645_v47, %v552_v39  ;;  %v773_v51 = vmul.f32 %v640_v48, %v549_v40  ;;  %v774_v52 = vmul.f32 %v640_v48, %v550_v41  ;;  %v563_v30 = vld [vmem:[%s3766_s3 + $0xf0] sm:$0xff]  ;;  %v564_v40 = vld [vmem:[%s3766_s3 + $0xf8] sm:$0xff]  ;;  %v561_v41 = vld [vmem:[%s3766_s3 + $0xe0] sm:$0xff] }
  0xb6   : > { %v914_v53 = vmax.f32 %v2774_v43, %v2777_v46  ;;  %v917_v15 = vmax.f32 %v2793_v62, %v2796_v63  ;;  %v562_v47 = vld [vmem:[%s3766_s3 + $0xe8] sm:$0xff] }
  0xb7   : > { %v2802_v1 = vmul.f32 %v2674_v44, %v773_v51  ;;  %v2805_v2 = vmul.f32 %v2677_v45, %v774_v52  ;;  %v2808_v5 = vmul.f32 %v2674_v44, %v775_v49  ;;  %v2811_v11 = vmul.f32 %v2677_v45, %v776_v50 }
  0xb8   : > { %915 = vmax.xlane.f32.xlu1 %v914_v53  ;;  %912 = vmax.xlane.f32.xlu0 %v911_v54  ;;  %v655_v3 = vpop.permute.xlu1 %654  ;;  %v650_v4 = vpop.permute.xlu0 %649 }
  0xb9   : > { %v779_v6 = vmul.f32 %v655_v3, %v555_v55  ;;  %v777_v9 = vmul.f32 %v650_v4, %v553_v58  ;;  %v778_v10 = vmul.f32 %v650_v4, %v554_v59  ;;  %v780_v13 = vmul.f32 %v655_v3, %v556_v0  ;;  %v567_v3 = vld [vmem:[%s3766_s3 + $0x110] sm:$0xff]  ;;  %v565_v4 = vld [vmem:[%s3766_s3 + $0x100] sm:$0xff] }
  0xba   : > { %v920_v14 = vmax.f32 %v2802_v1, %v2805_v2  ;;  %v923_v29 = vmax.f32 %v2808_v5, %v2811_v11 }
  0xbb   : > { %v2830_v21 = vmul.f32 %v2674_v44, %v777_v9  ;;  %v2833_v22 = vmul.f32 %v2677_v45, %v778_v10  ;;  %v2841_v32 = vmul.f32 %v2674_v44, %v779_v6  ;;  %v2855_v48 = vmul.f32 %v2677_v45, %v780_v13  ;;  %v566_v6 = vld [vmem:[%s3766_s3 + $0x108] sm:$0xff]  ;;  %v568_v13 = vld [vmem:[%s3766_s3 + $0x118] sm:$0xff] }
  0xbc   : > { %921 = vmax.xlane.f32.xlu1 %v920_v14  ;;  %918 = vmax.xlane.f32.xlu0 %v917_v15  ;;  %v665_v25 = vpop.permute.xlu1 %664  ;;  %v660_v26 = vpop.permute.xlu0 %659 }
  0xbd   : > { %v781_v27 = vmul.f32 %v660_v26, %v557_v17  ;;  %v782_v28 = vmul.f32 %v660_v26, %v558_v18  ;;  %v783_v33 = vmul.f32 %v665_v25, %v559_v19  ;;  %v784_v34 = vmul.f32 %v665_v25, %v560_v20 }
  0xbe   : > { %v926_v39 = vmax.f32 %v2830_v21, %v2833_v22  ;;  %v929_v0 = vmax.f32 %v2841_v32, %v2855_v48 }
  0xbf   : > { %v2858_v49 = vmul.f32 %v2674_v44, %v781_v27  ;;  %v2861_v50 = vmul.f32 %v2677_v45, %v782_v28  ;;  %v2877_v9 = vmul.f32 %v2674_v44, %v783_v33  ;;  %v2880_v10 = vmul.f32 %v2677_v45, %v784_v34  ;;  %v569_v33 = vld [vmem:[%s3766_s3 + $0x120] sm:$0xff]  ;;  %v570_v34 = vld [vmem:[%s3766_s3 + $0x128] sm:$0xff] }
  0xc0   : > { %927 = vmax.xlane.f32.xlu1 %v926_v39  ;;  %924 = vmax.xlane.f32.xlu0 %v923_v29  ;;  %v675_v51 = vpop.permute.xlu1 %674  ;;  %v670_v52 = vpop.permute.xlu0 %669  ;;  %v571_v39 = vld [vmem:[%s3766_s3 + $0x130] sm:$0xff] }
  0xc1   : > { %v787_v53 = vmul.f32 %v675_v51, %v563_v30  ;;  %v788_v54 = vmul.f32 %v675_v51, %v564_v40  ;;  %v785_v55 = vmul.f32 %v670_v52, %v561_v41  ;;  %v786_v58 = vmul.f32 %v670_v52, %v562_v47  ;;  %v572_v40 = vld [vmem:[%s3766_s3 + $0x138] sm:$0xff] }
  0xc2   : > { %v932_v59 = vmax.f32 %v2858_v49, %v2861_v50  ;;  %v935_v30 = vmax.f32 %v2877_v9, %v2880_v10 }
  0xc3   : > { %v2886_v14 = vmul.f32 %v2674_v44, %v785_v55  ;;  %v2889_v15 = vmul.f32 %v2677_v45, %v786_v58  ;;  %v2892_v19 = vmul.f32 %v2674_v44, %v787_v53  ;;  %v2895_v27 = vmul.f32 %v2677_v45, %v788_v54  ;;  %v575_v58 = vld [vmem:[%s3766_s3 + $0x150] sm:$0xff] }
  0xc4   : > { %933 = vmax.xlane.f32.xlu1 %v932_v59  ;;  %930 = vmax.xlane.f32.xlu0 %v929_v0  ;;  %v685_v17 = vpop.permute.xlu1 %684  ;;  %v680_v18 = vpop.permute.xlu0 %679 }
  0xc5   : > { %v791_v20 = vmul.f32 %v685_v17, %v567_v3  ;;  %v789_v25 = vmul.f32 %v680_v18, %v565_v4  ;;  %v790_v26 = vmul.f32 %v680_v18, %v566_v6  ;;  %v792_v28 = vmul.f32 %v685_v17, %v568_v13  ;;  %v576_v6 = vld [vmem:[%s3766_s3 + $0x158] sm:$0xff]  ;;  %v573_v13 = vld [vmem:[%s3766_s3 + $0x140] sm:$0xff]  ;;  %v574_v17 = vld [vmem:[%s3766_s3 + $0x148] sm:$0xff] }
  0xc6   : > { %v938_v29 = vmax.f32 %v2886_v14, %v2889_v15  ;;  %v941_v55 = vmax.f32 %v2892_v19, %v2895_v27 }
  0xc7   : > { %v2914_v41 = vmul.f32 %v2674_v44, %v789_v25  ;;  %v2917_v47 = vmul.f32 %v2677_v45, %v790_v26  ;;  %v2925_v59 = vmul.f32 %v2674_v44, %v791_v20  ;;  %v2939_v18 = vmul.f32 %v2677_v45, %v792_v28 }
  0xc8   : > { %939 = vmax.xlane.f32.xlu1 %v938_v29  ;;  %936 = vmax.xlane.f32.xlu0 %v935_v30  ;;  %v695_v51 = vpop.permute.xlu1 %694  ;;  %v690_v52 = vpop.permute.xlu0 %689 }
  0xc9   : > { %v793_v53 = vmul.f32 %v690_v52, %v569_v33  ;;  %v794_v54 = vmul.f32 %v690_v52, %v570_v34  ;;  %v795_v0 = vmul.f32 %v695_v51, %v571_v39  ;;  %v796_v3 = vmul.f32 %v695_v51, %v572_v40  ;;  %v579_v51 = vld [vmem:[%s3766_s3 + $0x170] sm:$0xff]  ;;  %v577_v52 = vld [vmem:[%s3766_s3 + $0x160] sm:$0xff] }
  0xca   : > { %v944_v4 = vmax.f32 %v2914_v41, %v2917_v47  ;;  %v947_v28 = vmax.f32 %v2925_v59, %v2939_v18 }
  0xcb   : > { %v2942_v20 = vmul.f32 %v2674_v44, %v793_v53  ;;  %v2945_v25 = vmul.f32 %v2677_v45, %v794_v54  ;;  %v578_v53 = vld [vmem:[%s3766_s3 + $0x168] sm:$0xff]  ;;  %v2961_v54 = vmul.f32 %v2674_v44, %v795_v0 }
  0xcc   : > { %945 = vmax.xlane.f32.xlu1 %v944_v4  ;;  %942 = vmax.xlane.f32.xlu0 %v941_v55  ;;  %v705_v26 = vpop.permute.xlu1 %704  ;;  %v700_v29 = vpop.permute.xlu0 %699  ;;  %v2964_v55 = vmul.f32 %v2677_v45, %v796_v3 }
  0xcd   : > { %v799_v30 = vmul.f32 %v705_v26, %v575_v58  ;;  %v800_v33 = vmul.f32 %v705_v26, %v576_v6  ;;  %v797_v34 = vmul.f32 %v700_v29, %v573_v13  ;;  %v798_v39 = vmul.f32 %v700_v29, %v574_v17  ;;  %3824 = vst [vmem:[#allocation11_spill] sm:$0xff] %v2961_v54  ;;  %v580_v58 = vld [vmem:[%s3766_s3 + $0x178] sm:$0xff] }
  0xce   : > { %v950_v40 = vmax.f32 %v2942_v20, %v2945_v25  ;;  %3825 = vst [vmem:[#allocation12_spill] sm:$0xff] %v2964_v55 }
  0xcf   : > { %v2970_v4 = vmul.f32 %v2674_v44, %v797_v34  ;;  %v2973_v6 = vmul.f32 %v2677_v45, %v798_v39  ;;  %v2976_v0 = vmul.f32 %v2674_v44, %v799_v30  ;;  %v2979_v35 = vmul.f32 %v2677_v45, %v800_v33  ;;  %v582_v30 = vld [vmem:[%s3766_s3 + $0x188] sm:$0xff]  ;;  %v583_v33 = vld [vmem:[%s3766_s3 + $0x190] sm:$0xff] }
  0xd0   : > { %951 = vmax.xlane.f32.xlu1 %v950_v40  ;;  %948 = vmax.xlane.f32.xlu0 %v947_v28  ;;  %v715_v13 = vpop.permute.xlu1 %714  ;;  %v710_v17 = vpop.permute.xlu0 %709  ;;  %v953_v39 = vmax.f32 %v2961_v54, %v2964_v55  ;;  %v581_v40 = vld [vmem:[%s3766_s3 + $0x180] sm:$0xff]  ;;  %v584_v28 = vld [vmem:[%s3766_s3 + $0x198] sm:$0xff] }
  0xd1   : > { %3826 = vst [vmem:[#allocation13_spill] sm:$0xff] %v2976_v0  ;;  %v803_v26 = vmul.f32 %v715_v13, %v579_v51  ;;  %v801_v3 = vmul.f32 %v710_v17, %v577_v52  ;;  %v802_v29 = vmul.f32 %v710_v17, %v578_v53  ;;  %3827 = vst [vmem:[#allocation14_spill] sm:$0xff] %v2979_v35 }
  0xd2   : > { %v804_v38 = vmul.f32 %v715_v13, %v580_v58  ;;  %v956_v34 = vmax.f32 %v2970_v4, %v2973_v6  ;;  %v959_v37 = vmax.f32 %v2976_v0, %v2979_v35 }
  0xd3   : > { %v2998_v51 = vmul.f32 %v2674_v44, %v801_v3  ;;  %v3001_v52 = vmul.f32 %v2677_v45, %v802_v29  ;;  %v3009_v55 = vmul.f32 %v2674_v44, %v803_v26 }
  0xd4   : > { %957 = vmax.xlane.f32.xlu1 %v956_v34  ;;  %954 = vmax.xlane.f32.xlu0 %v953_v39  ;;  %v725_v53 = vpop.permute.xlu1 %724  ;;  %v720_v58 = vpop.permute.xlu0 %719  ;;  %v588_v34 = vld [vmem:[%s3766_s3 + $0x1b8] sm:$0xff]  ;;  %v585_v39 = vld [vmem:[%s3766_s3 + $0x1a0] sm:$0xff]  ;;  %v3023_v26 = vmul.f32 %v2677_v45, %v804_v38 }
  0xd5   : > { %3828 = vst [vmem:[#allocation15_spill] sm:$0xff] %v2998_v51  ;;  %3829 = vst [vmem:[#allocation16_spill] sm:$0xff] %v3001_v52  ;;  %v805_v13 = vmul.f32 %v720_v58, %v581_v40  ;;  %v806_v17 = vmul.f32 %v720_v58, %v582_v30  ;;  %v807_v3 = vmul.f32 %v725_v53, %v583_v33  ;;  %v586_v40 = vld [vmem:[%s3766_s3 + $0x1a8] sm:$0xff] }
  0xd6   : > { %3830 = vst [vmem:[#allocation17_spill] sm:$0xff] %v3009_v55  ;;  %v808_v54 = vmul.f32 %v725_v53, %v584_v28  ;;  %v962_v29 = vmax.f32 %v2998_v51, %v3001_v52  ;;  %3831 = vst [vmem:[#allocation18_spill] sm:$0xff] %v3023_v26  ;;  %v965_v38 = vmax.f32 %v3009_v55, %v3023_v26 }
  0xd7   : > { %v3026_v30 = vmul.f32 %v2674_v44, %v805_v13  ;;  %v3029_v33 = vmul.f32 %v2677_v45, %v806_v17  ;;  %v591_v13 = vld [vmem:[%s3766_s3 + $0x1d0] sm:$0xff]  ;;  %v3045_v17 = vmul.f32 %v2674_v44, %v807_v3 }
  0xd8   : > { %963 = vmax.xlane.f32.xlu1 %v962_v29  ;;  %960 = vmax.xlane.f32.xlu0 %v959_v37  ;;  %v735_v28 = vpop.permute.xlu1 %734  ;;  %v730_v53 = vpop.permute.xlu0 %729  ;;  %v589_v37 = vld [vmem:[%s3766_s3 + $0x1c0] sm:$0xff]  ;;  %v3048_v29 = vmul.f32 %v2677_v45, %v808_v54 }
  0xd9   : > { %3832 = vst [vmem:[#allocation19_spill] sm:$0xff] %v3026_v30  ;;  %3833 = vst [vmem:[#allocation20_spill] sm:$0xff] %v3029_v33  ;;  %v811_v58 = vmul.f32 %v735_v28, %v587_v36  ;;  %v812_v35 = vmul.f32 %v735_v28, %v588_v34  ;;  %v809_v0 = vmul.f32 %v730_v53, %v585_v39  ;;  %v590_v36 = vld [vmem:[%s3766_s3 + $0x1c8] sm:$0xff]  ;;  %v592_v34 = vld [vmem:[%s3766_s3 + $0x1d8] sm:$0xff] }
  0xda   : > { %v810_v52 = vmul.f32 %v730_v53, %v586_v40  ;;  %v968_v51 = vmax.f32 %v3026_v30, %v3029_v33  ;;  %3834 = vst [vmem:[#allocation21_spill] sm:$0xff] %v3045_v17  ;;  %3835 = vst [vmem:[#allocation22_spill] sm:$0xff] %v3048_v29 }
  0xdb   : > { %v3054_v39 = vmul.f32 %v2674_v44, %v809_v0  ;;  %v3060_v3 = vmul.f32 %v2674_v44, %v811_v58  ;;  %v3063_v33 = vmul.f32 %v2677_v45, %v812_v35  ;;  %v594_v58 = vld [vmem:[%s3766_s3 + $0x1e8] sm:$0xff]  ;;  %v595_v35 = vld [vmem:[%s3766_s3 + $0x1f0] sm:$0xff] }
  0xdc   : > { %v3057_v40 = vmul.f32 %v2677_v45, %v810_v52  ;;  %969 = vmax.xlane.f32.xlu1 %v968_v51  ;;  %966 = vmax.xlane.f32.xlu0 %v965_v38  ;;  %v745_v28 = vpop.permute.xlu1 %744  ;;  %v740_v53 = vpop.permute.xlu0 %739  ;;  %v971_v52 = vmax.f32 %v3045_v17, %v3048_v29  ;;  %v593_v51 = vld [vmem:[%s3766_s3 + $0x1e0] sm:$0xff]  ;;  %v596_v38 = vld [vmem:[%s3766_s3 + $0x1f8] sm:$0xff] }
  0xdd   : > { %3836 = vst [vmem:[#allocation23_spill] sm:$0xff] %v3054_v39  ;;  %v815_v26 = vmul.f32 %v745_v28, %v591_v13  ;;  %v813_v54 = vmul.f32 %v740_v53, %v589_v37  ;;  %v814_v55 = vmul.f32 %v740_v53, %v590_v36  ;;  %v816_v30 = vmul.f32 %v745_v28, %v592_v34 }
  0xde   : > { %3837 = vst [vmem:[#allocation24_spill] sm:$0xff] %v3057_v40  ;;  %v974_v0 = vmax.f32 %v3054_v39, %v3057_v40  ;;  %v977_v29 = vmax.f32 %v3060_v3, %v3063_v33 }
  0xdf   : > { %v3082_v13 = vmul.f32 %v2674_v44, %v813_v54  ;;  %v3085_v37 = vmul.f32 %v2677_v45, %v814_v55  ;;  %v3090_v17 = vmul.f32 %v2674_v44, %v815_v26  ;;  %v3095_v55 = vmul.f32 %v2677_v45, %v816_v30 }
  0xe0   : > { %975 = vmax.xlane.f32.xlu1 %v974_v0  ;;  %972 = vmax.xlane.f32.xlu0 %v971_v52  ;;  %v755_v36 = vpop.permute.xlu1 %754  ;;  %v750_v34 = vpop.permute.xlu0 %749 }
  0xe1   : > { %v817_v28 = vmul.f32 %v750_v34, %v593_v51  ;;  %v818_v53 = vmul.f32 %v750_v34, %v594_v58  ;;  %v819_v40 = vmul.f32 %v755_v36, %v595_v35  ;;  %v820_v39 = vmul.f32 %v755_v36, %v596_v38 }
  0xe2   : > { %v980_v54 = vmax.f32 %v3082_v13, %v3085_v37  ;;  %v983_v51 = vmax.f32 %v3090_v17, %v3095_v55 }
  0xe3   : > { %v3098_v0 = vmul.f32 %v2674_v44, %v817_v28  ;;  %v3101_v52 = vmul.f32 %v2677_v45, %v818_v53  ;;  %v3108_v58 = vmul.f32 %v2674_v44, %v819_v40  ;;  %v3111_v30 = vmul.f32 %v2677_v45, %v820_v39 }
  0xe4   : > { %981 = vmax.xlane.f32.xlu1 %v980_v54  ;;  %978 = vmax.xlane.f32.xlu0 %v977_v29 }
  0xe5   : > { %v986_v26 = vmax.f32 %v3098_v0, %v3101_v52  ;;  %3838 = vst [vmem:[#allocation25_spill] sm:$0xff] %v3111_v30  ;;  %v989_v35 = vmax.f32 %v3108_v58, %v3111_v30 }
  0xe8   : > { %987 = vmax.xlane.f32.xlu1 %v986_v26  ;;  %984 = vmax.xlane.f32.xlu0 %v983_v51 }
  0xec   : > { %990 = vmax.xlane.f32.xlu0 %v989_v35 }
 0x139   : > { %v898_v38 = vpop.xlane.xlu0 %897 }
 0x13a   : > { %v992_v29 = vsub.f32 %v2692_v56, %v898_v38  ;;  %v993_v36 = vsub.f32 %v2695_v57, %v898_v38 }
 0x13c   : > { %v1056_v34 = vmul.f32 1.442695, %v992_v29  ;;  %v1058_v28 = vmul.f32 1.442695, %v993_v36 }
 0x13d   : > { %v901_v53 = vpop.xlane.xlu1 %900  ;;  %v904_v54 = vpop.xlane.xlu0 %903 }
 0x13e   : > { %2262 = vpow2.f32 %v1056_v34  ;;  %v994_v44 = vsub.f32 %v2718_v7, %v901_v53  ;;  %v995_v45 = vsub.f32 %v2721_v8, %v901_v53  ;;  %v996_v39 = vsub.f32 %v2698_v60, %v904_v54 }
 0x13f   : > { %2264 = vpow2.f32 %v1058_v28  ;;  %v997_v40 = vsub.f32 %v2701_v61, %v904_v54 }
 0x140   : > { %v1060_v26 = vmul.f32 1.442695, %v994_v44  ;;  %v1062_v51 = vmul.f32 1.442695, %v995_v45  ;;  %v1064_v35 = vmul.f32 1.442695, %v996_v39 }
 0x141   : > { %v1066_v56 = vmul.f32 1.442695, %v997_v40  ;;  %v910_v30 = vpop.xlane.xlu1 %909  ;;  %v907_v57 = vpop.xlane.xlu0 %906 }
 0x142   : > { %2266 = vpow2.f32 %v1060_v26  ;;  %v1000_v38 = vsub.f32 %v2746_v23, %v910_v30  ;;  %v1001_v29 = vsub.f32 %v2749_v24, %v910_v30  ;;  %v998_v7 = vsub.f32 %v2726_v12, %v907_v57 }
 0x143   : > { %2268 = vpow2.f32 %v1062_v51  ;;  %v999_v8 = vsub.f32 %v2729_v16, %v907_v57 }
 0x144   : > { %2270 = vpow2.f32 %v1064_v35  ;;  %v1072_v60 = vmul.f32 1.442695, %v1000_v38  ;;  %v1074_v36 = vmul.f32 1.442695, %v1001_v29  ;;  %v1068_v61 = vmul.f32 1.442695, %v998_v7 }
 0x145   : > { %2272 = vpow2.f32 %v1066_v56  ;;  %v1070_v34 = vmul.f32 1.442695, %v999_v8  ;;  %v916_v28 = vpop.xlane.xlu1 %915  ;;  %v913_v53 = vpop.xlane.xlu0 %912 }
 0x146   : > { %2274 = vpow2.f32 %v1072_v60  ;;  %v1004_v54 = vsub.f32 %v2774_v43, %v916_v28  ;;  %v1005_v23 = vsub.f32 %v2777_v46, %v916_v28  ;;  %v1002_v24 = vsub.f32 %v2757_v31, %v913_v53 }
 0x147   : > { %2276 = vpow2.f32 %v1074_v36  ;;  %v1003_v12 = vsub.f32 %v2771_v42, %v913_v53 }
 0x148   : > { %v3129_v30 = vpop.eup %2262  ;;  %2278 = vpow2.f32 %v1068_v61  ;;  %v1080_v16 = vmul.f32 1.442695, %v1004_v54  ;;  %v1082_v44 = vmul.f32 1.442695, %v1005_v23  ;;  %v1076_v45 = vmul.f32 1.442695, %v1002_v24 }
 0x149   : > { %v3131_v39 = vpop.eup %2264  ;;  %2280 = vpow2.f32 %v1070_v34  ;;  %v1078_v40 = vmul.f32 1.442695, %v1003_v12  ;;  %v922_v26 = vpop.xlane.xlu1 %921 }
 0x14a   : > { %v919_v51 = vpop.xlane.xlu0 %918  ;;  %2282 = vpow2.f32 %v1080_v16  ;;  %v1008_v43 = vsub.f32 %v2802_v1, %v922_v26  ;;  %v1009_v31 = vsub.f32 %v2805_v2, %v922_v26  ;;  %v1184_v35 = vadd.f32 %v3131_v39, %v3129_v30 }
 0x14b   : > { %v1006_v46 = vsub.f32 %v2793_v62, %v919_v51  ;;  %2284 = vpow2.f32 %v1082_v44  ;;  %v1007_v42 = vsub.f32 %v2796_v63, %v919_v51 }
 0x14c   : > { %v3139_v56 = vpop.eup %2266  ;;  %2286 = vpow2.f32 %v1076_v45  ;;  %v1088_v57 = vmul.f32 1.442695, %v1008_v43  ;;  %v1090_v38 = vmul.f32 1.442695, %v1009_v31  ;;  %1185 = vadd.xlane.f32.xlu1 %v1184_v35 }
 0x14d   : > { %v1084_v29 = vmul.f32 1.442695, %v1006_v46  ;;  %v3141_v7 = vpop.eup %2268  ;;  %2288 = vpow2.f32 %v1078_v40  ;;  %v1086_v1 = vmul.f32 1.442695, %v1007_v42  ;;  %v928_v2 = vpop.xlane.xlu1 %927 }
 0x14e   : > { %v925_v8 = vpop.xlane.xlu0 %924  ;;  %v3143_v62 = vpop.eup %2270  ;;  %2290 = vpow2.f32 %v1088_v57  ;;  %v1012_v63 = vsub.f32 %v2830_v21, %v928_v2  ;;  %v1013_v60 = vsub.f32 %v2833_v22, %v928_v2  ;;  %v1187_v28 = vadd.f32 %v3141_v7, %v3139_v56 }
 0x14f   : > { %v1010_v36 = vsub.f32 %v2808_v5, %v925_v8  ;;  %v3148_v61 = vpop.eup %2272  ;;  %2292 = vpow2.f32 %v1090_v38  ;;  %v1011_v34 = vsub.f32 %v2811_v11, %v925_v8 }
 0x150   : > { %v3153_v53 = vpop.eup %2274  ;;  %2294 = vpow2.f32 %v1084_v29  ;;  %v1096_v54 = vmul.f32 1.442695, %v1012_v63  ;;  %v1098_v23 = vmul.f32 1.442695, %v1013_v60  ;;  %1188 = vadd.xlane.f32.xlu0 %v1187_v28  ;;  %v1190_v5 = vadd.f32 %v3148_v61, %v3143_v62 }
 0x151   : > { %v1092_v24 = vmul.f32 1.442695, %v1010_v36  ;;  %v3155_v12 = vpop.eup %2276  ;;  %2296 = vpow2.f32 %v1086_v1  ;;  %v1094_v21 = vmul.f32 1.442695, %v1011_v34  ;;  %v934_v22 = vpop.xlane.xlu1 %933 }
 0x152   : > { %v931_v16 = vpop.xlane.xlu0 %930  ;;  %v3159_v11 = vpop.eup %2278  ;;  %2298 = vpow2.f32 %v1096_v54  ;;  %v1016_v44 = vsub.f32 %v2858_v49, %v934_v22  ;;  %v1017_v45 = vsub.f32 %v2861_v50, %v934_v22  ;;  %1191 = vadd.xlane.f32.xlu1 %v1190_v5  ;;  %v1196_v43 = vadd.f32 %v3155_v12, %v3153_v53 }
 0x153   : > { %v1014_v40 = vsub.f32 %v2841_v32, %v931_v16  ;;  %v3164_v26 = vpop.eup %2280  ;;  %2300 = vpow2.f32 %v1098_v23  ;;  %v1015_v51 = vsub.f32 %v2855_v48, %v931_v16 }
 0x154   : > { %v3169_v31 = vpop.eup %2282  ;;  %2302 = vpow2.f32 %v1092_v24  ;;  %v1104_v46 = vmul.f32 1.442695, %v1016_v44  ;;  %v1106_v42 = vmul.f32 1.442695, %v1017_v45  ;;  %v1193_v32 = vadd.f32 %v3164_v26, %v3159_v11 }
 0x155   : > { %v1100_v35 = vmul.f32 1.442695, %v1014_v40  ;;  %v3171_v49 = vpop.eup %2284  ;;  %2304 = vpow2.f32 %v1094_v21  ;;  %v1102_v50 = vmul.f32 1.442695, %v1015_v51  ;;  %v940_v57 = vpop.xlane.xlu1 %939 }
 0x156   : > { %v937_v38 = vpop.xlane.xlu0 %936  ;;  %v3175_v29 = vpop.eup %2286  ;;  %2306 = vpow2.f32 %v1104_v46  ;;  %v1020_v48 = vsub.f32 %v2886_v14, %v940_v57  ;;  %v1021_v1 = vsub.f32 %v2889_v15, %v940_v57  ;;  %1197 = vadd.xlane.f32.xlu1 %v1196_v43  ;;  %1194 = vadd.xlane.f32.xlu0 %v1193_v32  ;;  %v1202_v60 = vadd.f32 %v3171_v49, %v3169_v31 }
 0x157   : > { %v1018_v2 = vsub.f32 %v2877_v9, %v937_v38  ;;  %v3180_v8 = vpop.eup %2288  ;;  %2308 = vpow2.f32 %v1106_v42  ;;  %v1019_v63 = vsub.f32 %v2880_v10, %v937_v38 }
 0x158   : > { %v3185_v36 = vpop.eup %2290  ;;  %2310 = vpow2.f32 %v1100_v35  ;;  %v1112_v34 = vmul.f32 1.442695, %v1020_v48  ;;  %v1114_v28 = vmul.f32 1.442695, %v1021_v1  ;;  %v1199_v15 = vadd.f32 %v3180_v8, %v3175_v29 }
 0x159   : > { %v1108_v14 = vmul.f32 1.442695, %v1018_v2  ;;  %v3187_v54 = vpop.eup %2292  ;;  %2312 = vpow2.f32 %v1102_v50  ;;  %v1110_v9 = vmul.f32 1.442695, %v1019_v63  ;;  %v946_v23 = vpop.xlane.xlu1 %945 }
 0x15a   : > { %v943_v24 = vpop.xlane.xlu0 %942  ;;  %v3191_v21 = vpop.eup %2294  ;;  %2314 = vpow2.f32 %v1112_v34  ;;  %v1024_v10 = vsub.f32 %v2914_v41, %v946_v23  ;;  %v1025_v5 = vsub.f32 %v2917_v47, %v946_v23  ;;  %1203 = vadd.xlane.f32.xlu1 %v1202_v60  ;;  %1200 = vadd.xlane.f32.xlu0 %v1199_v15  ;;  %v1208_v45 = vadd.f32 %v3187_v54, %v3185_v36  ;;  %v3839_v23 = vld [vmem:[#allocation11_spill] sm:$0xff] }
 0x15b   : > { %v1022_v22 = vsub.f32 %v2892_v19, %v943_v24  ;;  %v3196_v16 = vpop.eup %2296  ;;  %2316 = vpow2.f32 %v1114_v28  ;;  %v1023_v44 = vsub.f32 %v2895_v27, %v943_v24 }
 0x15c   : > { %v3201_v40 = vpop.eup %2298  ;;  %2318 = vpow2.f32 %v1108_v14  ;;  %v1120_v51 = vmul.f32 1.442695, %v1024_v10  ;;  %v1122_v43 = vmul.f32 1.442695, %v1025_v5  ;;  %v1205_v47 = vadd.f32 %v3196_v16, %v3191_v21  ;;  %v3840_v5 = vld [vmem:[#allocation12_spill] sm:$0xff] }
 0x15d   : > { %v1116_v41 = vmul.f32 1.442695, %v1022_v22  ;;  %v3203_v46 = vpop.eup %2300  ;;  %2320 = vpow2.f32 %v1110_v9  ;;  %v1118_v19 = vmul.f32 1.442695, %v1023_v44  ;;  %v952_v42 = vpop.xlane.xlu1 %951 }
 0x15e   : > { %v949_v35 = vpop.xlane.xlu0 %948  ;;  %v3207_v50 = vpop.eup %2302  ;;  %2322 = vpow2.f32 %v1120_v51  ;;  %v1028_v27 = vsub.f32 %v2942_v20, %v952_v42  ;;  %v1029_v32 = vsub.f32 %v2945_v25, %v952_v42  ;;  %1209 = vadd.xlane.f32.xlu1 %v1208_v45  ;;  %1206 = vadd.xlane.f32.xlu0 %v1205_v47  ;;  %v1214_v1 = vadd.f32 %v3203_v46, %v3201_v40 }
 0x15f   : > { %v1026_v57 = vsub.f32 %v2925_v59, %v949_v35  ;;  %v3212_v38 = vpop.eup %2304  ;;  %2324 = vpow2.f32 %v1122_v43  ;;  %v1027_v48 = vsub.f32 %v2939_v18, %v949_v35 }
 0x160   : > { %v3217_v2 = vpop.eup %2306  ;;  %2326 = vpow2.f32 %v1116_v41  ;;  %v1128_v63 = vmul.f32 1.442695, %v1028_v27  ;;  %v1130_v60 = vmul.f32 1.442695, %v1029_v32  ;;  %v1211_v25 = vadd.f32 %v3212_v38, %v3207_v50  ;;  %v3841_v27 = vld [vmem:[#allocation15_spill] sm:$0xff] }
 0x161   : > { %v1124_v20 = vmul.f32 1.442695, %v1026_v57  ;;  %v3219_v34 = vpop.eup %2308  ;;  %2328 = vpow2.f32 %v1118_v19  ;;  %v1126_v59 = vmul.f32 1.442695, %v1027_v48  ;;  %v958_v28 = vpop.xlane.xlu1 %957  ;;  %v3842_v57 = vld [vmem:[#allocation16_spill] sm:$0xff] }
 0x162   : > { %v955_v14 = vpop.xlane.xlu0 %954  ;;  %v3223_v9 = vpop.eup %2310  ;;  %2330 = vpow2.f32 %v1128_v63  ;;  %v1032_v18 = vsub.f32 %v2970_v4, %v958_v28  ;;  %v1033_v15 = vsub.f32 %v2973_v6, %v958_v28  ;;  %1215 = vadd.xlane.f32.xlu1 %v1214_v1  ;;  %1212 = vadd.xlane.f32.xlu0 %v1211_v25  ;;  %v1220_v44 = vadd.f32 %v3219_v34, %v3217_v2  ;;  %v3843_v1 = vld [vmem:[#allocation13_spill] sm:$0xff] }
 0x163   : > { %v1030_v24 = vsub.f32 %v3839_v23, %v955_v14  ;;  %v3228_v10 = vpop.eup %2312  ;;  %2332 = vpow2.f32 %v1130_v60  ;;  %v1031_v22 = vsub.f32 %v3840_v5, %v955_v14 }
 0x164   : > { %v3233_v45 = vpop.eup %2314  ;;  %2334 = vpow2.f32 %v1124_v20  ;;  %v1136_v51 = vmul.f32 1.442695, %v1032_v18  ;;  %v1138_v43 = vmul.f32 1.442695, %v1033_v15  ;;  %v1217_v19 = vadd.f32 %v3228_v10, %v3223_v9  ;;  %v3844_v20 = vld [vmem:[#allocation14_spill] sm:$0xff] }
 0x165   : > { %v1132_v4 = vmul.f32 1.442695, %v1030_v24  ;;  %v3235_v41 = vpop.eup %2316  ;;  %2336 = vpow2.f32 %v1126_v59  ;;  %v1134_v6 = vmul.f32 1.442695, %v1031_v22  ;;  %v964_v47 = vpop.xlane.xlu1 %963 }
 0x166   : > { %v961_v42 = vpop.xlane.xlu0 %960  ;;  %v3239_v35 = vpop.eup %2318  ;;  %2338 = vpow2.f32 %v1136_v51  ;;  %v1036_v32 = vsub.f32 %v3841_v27, %v964_v47  ;;  %v1037_v48 = vsub.f32 %v3842_v57, %v964_v47  ;;  %1221 = vadd.xlane.f32.xlu1 %v1220_v44  ;;  %1218 = vadd.xlane.f32.xlu0 %v1217_v19  ;;  %v1226_v25 = vadd.f32 %v3235_v41, %v3233_v45  ;;  %v3848_v47 = vld [vmem:[#allocation20_spill] sm:$0xff] }
 0x167   : > { %v1034_v63 = vsub.f32 %v3843_v1, %v961_v42  ;;  %v3244_v60 = vpop.eup %2320  ;;  %2340 = vpow2.f32 %v1138_v43  ;;  %v1035_v59 = vsub.f32 %v3844_v20, %v961_v42  ;;  %v3847_v43 = vld [vmem:[#allocation19_spill] sm:$0xff] }
 0x168   : > { %v3249_v28 = vpop.eup %2322  ;;  %2342 = vpow2.f32 %v1132_v4  ;;  %v1144_v14 = vmul.f32 1.442695, %v1036_v32  ;;  %v1146_v18 = vmul.f32 1.442695, %v1037_v48  ;;  %v1223_v5 = vadd.f32 %v3244_v60, %v3239_v35  ;;  %v3849_v4 = vld [vmem:[#allocation17_spill] sm:$0xff] }
 0x169   : > { %3845 = vst [vmem:[#allocation11_spill] sm:$0xff] %v3249_v28  ;;  %v1140_v15 = vmul.f32 1.442695, %v1034_v63  ;;  %v3251_v23 = vpop.eup %2324  ;;  %2344 = vpow2.f32 %v1134_v6  ;;  %v1142_v24 = vmul.f32 1.442695, %v1035_v59  ;;  %v970_v22 = vpop.xlane.xlu1 %969  ;;  %v3851_v6 = vld [vmem:[#allocation18_spill] sm:$0xff] }
 0x16a   : > { %3846 = vst [vmem:[#allocation12_spill] sm:$0xff] %v3251_v23  ;;  %v967_v44 = vpop.xlane.xlu0 %966  ;;  %v3255_v51 = vpop.eup %2326  ;;  %2346 = vpow2.f32 %v1144_v14  ;;  %v1040_v19 = vsub.f32 %v3847_v43, %v970_v22  ;;  %v1041_v42 = vsub.f32 %v3848_v47, %v970_v22  ;;  %1227 = vadd.xlane.f32.xlu1 %v1226_v25  ;;  %1224 = vadd.xlane.f32.xlu0 %v1223_v5 }
 0x16b   : > { %v1038_v27 = vsub.f32 %v3849_v4, %v967_v44  ;;  %v3260_v32 = vpop.eup %2328  ;;  %2348 = vpow2.f32 %v1146_v18  ;;  %v1039_v57 = vsub.f32 %v3851_v6, %v967_v44  ;;  %v1232_v48 = vadd.f32 %v3251_v23, %v3249_v28  ;;  %v3852_v44 = vld [vmem:[#allocation23_spill] sm:$0xff]  ;;  %v3853_v4 = vld [vmem:[#allocation24_spill] sm:$0xff] }
 0x16c   : > { %3850 = vst [vmem:[#allocation15_spill] sm:$0xff] %v3260_v32  ;;  %v3265_v1 = vpop.eup %2330  ;;  %2350 = vpow2.f32 %v1140_v15  ;;  %v1152_v63 = vmul.f32 1.442695, %v1040_v19  ;;  %v1154_v20 = vmul.f32 1.442695, %v1041_v42  ;;  %v1229_v18 = vadd.f32 %v3260_v32, %v3255_v51  ;;  %v3854_v15 = vld [vmem:[#allocation21_spill] sm:$0xff] }
 0x16d   : > { %v1148_v59 = vmul.f32 1.442695, %v1038_v27  ;;  %v3267_v14 = vpop.eup %2332  ;;  %2352 = vpow2.f32 %v1142_v24  ;;  %v1150_v22 = vmul.f32 1.442695, %v1039_v57  ;;  %v976_v25 = vpop.xlane.xlu1 %975  ;;  %v3855_v24 = vld [vmem:[#allocation22_spill] sm:$0xff] }
 0x16e   : > { %v973_v5 = vpop.xlane.xlu0 %972  ;;  %v3271_v43 = vpop.eup %2334  ;;  %2354 = vpow2.f32 %v1152_v63  ;;  %v1044_v47 = vsub.f32 %v3852_v44, %v976_v25  ;;  %v1045_v6 = vsub.f32 %v3853_v4, %v976_v25  ;;  %1233 = vadd.xlane.f32.xlu1 %v1232_v48  ;;  %1230 = vadd.xlane.f32.xlu0 %v1229_v18  ;;  %v1238_v57 = vadd.f32 %v3267_v14, %v3265_v1 }
 0x16f   : > { %v1042_v19 = vsub.f32 %v3854_v15, %v973_v5  ;;  %v3276_v42 = vpop.eup %2336  ;;  %2356 = vpow2.f32 %v1154_v20  ;;  %v1043_v27 = vsub.f32 %v3855_v24, %v973_v5 }
 0x170   : > { %v3281_v23 = vpop.eup %2338  ;;  %2358 = vpow2.f32 %v1148_v59  ;;  %v1160_v63 = vmul.f32 1.442695, %v1044_v47  ;;  %v1162_v28 = vmul.f32 1.442695, %v1045_v6  ;;  %v1235_v20 = vadd.f32 %v3276_v42, %v3271_v43 }
 0x171   : > { %v1156_v44 = vmul.f32 1.442695, %v1042_v19  ;;  %v3283_v32 = vpop.eup %2340  ;;  %2360 = vpow2.f32 %v1150_v22  ;;  %v1158_v25 = vmul.f32 1.442695, %v1043_v27  ;;  %v982_v48 = vpop.xlane.xlu1 %981 }
 0x172   : > { %v979_v18 = vpop.xlane.xlu0 %978  ;;  %v3287_v4 = vpop.eup %2342  ;;  %2362 = vpow2.f32 %v1160_v63  ;;  %v1048_v5 = vsub.f32 %v3082_v13, %v982_v48  ;;  %v1049_v15 = vsub.f32 %v3085_v37, %v982_v48  ;;  %1239 = vadd.xlane.f32.xlu1 %v1238_v57  ;;  %1236 = vadd.xlane.f32.xlu0 %v1235_v20  ;;  %v1244_v6 = vadd.f32 %v3283_v32, %v3281_v23 }
 0x173   : > { %v1046_v59 = vsub.f32 %v3060_v3, %v979_v18  ;;  %v3292_v47 = vpop.eup %2344  ;;  %2364 = vpow2.f32 %v1162_v28  ;;  %v1047_v22 = vsub.f32 %v3063_v33, %v979_v18 }
 0x174   : > { %v3297_v19 = vpop.eup %2346  ;;  %2366 = vpow2.f32 %v1156_v44  ;;  %v1168_v24 = vmul.f32 1.442695, %v1048_v5  ;;  %v1170_v27 = vmul.f32 1.442695, %v1049_v15  ;;  %v1241_v37 = vadd.f32 %v3292_v47, %v3287_v4 }
 0x175   : > { %v1164_v13 = vmul.f32 1.442695, %v1046_v59  ;;  %v3299_v63 = vpop.eup %2348  ;;  %2368 = vpow2.f32 %v1158_v25  ;;  %v1166_v3 = vmul.f32 1.442695, %v1047_v22  ;;  %v988_v28 = vpop.xlane.xlu1 %987 }
 0x176   : > { %v985_v57 = vpop.xlane.xlu0 %984  ;;  %v3303_v20 = vpop.eup %2350  ;;  %2370 = vpow2.f32 %v1168_v24  ;;  %v1052_v33 = vsub.f32 %v3098_v0, %v988_v28  ;;  %v1053_v48 = vsub.f32 %v3101_v52, %v988_v28  ;;  %1245 = vadd.xlane.f32.xlu1 %v1244_v6  ;;  %1242 = vadd.xlane.f32.xlu0 %v1241_v37  ;;  %v1250_v5 = vadd.f32 %v3299_v63, %v3297_v19  ;;  %v3858_v37 = vld [vmem:[#allocation25_spill] sm:$0xff] }
 0x177   : > { %v1050_v44 = vsub.f32 %v3090_v17, %v985_v57  ;;  %v3308_v18 = vpop.eup %2352  ;;  %2372 = vpow2.f32 %v1170_v27  ;;  %v1051_v25 = vsub.f32 %v3095_v55, %v985_v57 }
 0x178   : > { %v3313_v15 = vpop.eup %2354  ;;  %2374 = vpow2.f32 %v1164_v13  ;;  %v1176_v59 = vmul.f32 1.442695, %v1052_v33  ;;  %v1178_v22 = vmul.f32 1.442695, %v1053_v48  ;;  %v1247_v52 = vadd.f32 %v3308_v18, %v3303_v20 }
 0x179   : > { %3856 = vst [vmem:[#allocation16_spill] sm:$0xff] %v3313_v15  ;;  %v1172_v0 = vmul.f32 1.442695, %v1050_v44  ;;  %v3315_v24 = vpop.eup %2356  ;;  %2376 = vpow2.f32 %v1166_v3  ;;  %v1174_v17 = vmul.f32 1.442695, %v1051_v25 }
 0x17a   : > { %3857 = vst [vmem:[#allocation13_spill] sm:$0xff] %v3315_v24  ;;  %v991_v6 = vpop.xlane.xlu0 %990  ;;  %v3319_v27 = vpop.eup %2358  ;;  %2378 = vpow2.f32 %v1176_v59  ;;  %1251 = vadd.xlane.f32.xlu1 %v1250_v5  ;;  %1248 = vadd.xlane.f32.xlu0 %v1247_v52  ;;  %v1256_v13 = vadd.f32 %v3315_v24, %v3313_v15  ;;  %v1763_v24 = vld [vmem:[%s2602_s18 + $0x28] sm:$0xff]  ;;  %v1765_v15 = vld [vmem:[%s2602_s18 + $0x38] sm:$0xff] }
 0x17b   : > { %v1054_v55 = vsub.f32 %v3108_v58, %v991_v6  ;;  %v1055_v28 = vsub.f32 %v3858_v37, %v991_v6  ;;  %v3323_v57 = vpop.eup %2360  ;;  %2380 = vpow2.f32 %v1178_v22 }
 0x17c   : > { %v3327_v3 = vpop.eup %2362  ;;  %2382 = vpow2.f32 %v1172_v0  ;;  %v1253_v44 = vadd.f32 %v3323_v57, %v3319_v27 }
 0x17d   : > { %3859 = vst [vmem:[#allocation14_spill] sm:$0xff] %v3327_v3  ;;  %v1180_v33 = vmul.f32 1.442695, %v1054_v55  ;;  %v1182_v48 = vmul.f32 1.442695, %v1055_v28  ;;  %v3331_v25 = vpop.eup %2364  ;;  %2384 = vpow2.f32 %v1174_v17 }
 0x17e   : > { %3860 = vst [vmem:[#allocation19_spill] sm:$0xff] %v3331_v25  ;;  %v3333_v58 = vpop.eup %2366  ;;  %1257 = vadd.xlane.f32.xlu1 %v1256_v13  ;;  %1254 = vadd.xlane.f32.xlu0 %v1253_v44  ;;  %v1262_v5 = vadd.f32 %v3331_v25, %v3327_v3 }
 0x17f   : > { %3861 = vst [vmem:[#allocation20_spill] sm:$0xff] %v3333_v58  ;;  %2386 = vpow2.f32 %v1180_v33  ;;  %v3335_v59 = vpop.eup %2368 }
 0x180   : > { %3862 = vst [vmem:[#allocation17_spill] sm:$0xff] %v3335_v59  ;;  %2388 = vpow2.f32 %v1182_v48  ;;  %v3339_v22 = vpop.eup %2370  ;;  %v1259_v0 = vadd.f32 %v3335_v59, %v3333_v58 }
 0x181   : > { %3863 = vst [vmem:[#allocation18_spill] sm:$0xff] %v3339_v22  ;;  %v3343_v52 = vpop.eup %2372 }
 0x182   : > { %3864 = vst [vmem:[#allocation23_spill] sm:$0xff] %v3343_v52  ;;  %v3345_v6 = vpop.eup %2374  ;;  %1263 = vadd.xlane.f32.xlu1 %v1262_v5  ;;  %1260 = vadd.xlane.f32.xlu0 %v1259_v0  ;;  %v1268_v55 = vadd.f32 %v3343_v52, %v3339_v22 }
 0x183   : > { %3865 = vst [vmem:[#allocation24_spill] sm:$0xff] %v3345_v6  ;;  %v3347_v17 = vpop.eup %2376 }
 0x184   : > { %3866 = vst [vmem:[#allocation21_spill] sm:$0xff] %v3347_v17  ;;  %v3351_v37 = vpop.eup %2378  ;;  %v1265_v28 = vadd.f32 %v3347_v17, %v3345_v6 }
 0x185   : > { %3867 = vst [vmem:[#allocation22_spill] sm:$0xff] %v3351_v37  ;;  %v3355_v13 = vpop.eup %2380 }
 0x186   : > { %3868 = vst [vmem:[#allocation25_spill] sm:$0xff] %v3355_v13  ;;  %v3357_v33 = vpop.eup %2382  ;;  %1269 = vadd.xlane.f32.xlu1 %v1268_v55  ;;  %1266 = vadd.xlane.f32.xlu0 %v1265_v28  ;;  %v1274_v44 = vadd.f32 %v3355_v13, %v3351_v37  ;;  %v501_v37 = vld [vmem:[%s2597_s12] sm:$0xff] }
 0x187   : > { %3869 = vst [vmem:[#allocation26_spill] sm:$0xff] %v3357_v33  ;;  %v3359_v48 = vpop.eup %2384 }
 0x188   : > { %3870 = vst [vmem:[#allocation27_spill] sm:$0xff] %v3359_v48  ;;  %v1271_v0 = vadd.f32 %v3359_v48, %v3357_v33 }
 0x189   : > { %v3363_v5 = vpop.eup %2386 }
 0x18a   : > { %3871 = vst [vmem:[#allocation28_spill] sm:$0xff] %v3363_v5  ;;  %v3367_v52 = vpop.eup %2388  ;;  %1275 = vadd.xlane.f32.xlu1 %v1274_v44  ;;  %1272 = vadd.xlane.f32.xlu0 %v1271_v0  ;;  %v502_v0 = vld [vmem:[%s2597_s12 + $0x8] sm:$0xff] }
 0x18b   : > { %3872 = vst [vmem:[#allocation29_spill] sm:$0xff] %v3367_v52  ;;  %v1277_v22 = vadd.f32 %v3367_v52, %v3363_v5 }
 0x18e   : > { %1278 = vadd.xlane.f32.xlu0 %v1277_v22 }
 0x1d9   : > { %v1186_v55 = vpop.xlane.xlu1 %1185 }
 0x1da   : > { %2390 = vrcp.f32 %v1186_v55  ;;  %v503_v55 = vld [vmem:[%s2597_s12 + $0x10] sm:$0xff] }
 0x1dd   : > { %v1189_v28 = vpop.xlane.xlu0 %1188 }
 0x1de   : > { %2392 = vrcp.f32 %v1189_v28 }
 0x1df   : > { %v1192_v13 = vpop.xlane.xlu1 %1191 }
 0x1e0   : > { %2394 = vrcp.f32 %v1192_v13 }
 0x1e3   : > { %v1198_v17 = vpop.xlane.xlu1 %1197  ;;  %v1195_v6 = vpop.xlane.xlu0 %1194 }
 0x1e4   : > { %v2391_v48 = vpop.eup %2390  ;;  %2396 = vrcp.f32 %v1198_v17 }
 0x1e5   : > { %2398 = vrcp.f32 %v1195_v6  ;;  %v1312_v44 = vmul.f32 %v2391_v48, %v501_v37  ;;  %v505_v6 = vld [vmem:[%s2597_s12 + $0x20] sm:$0xff]  ;;  %v504_v37 = vld [vmem:[%s2597_s12 + $0x18] sm:$0xff] }
 0x1e7   : > { %v1204_v33 = vpop.xlane.xlu1 %1203  ;;  %v1201_v25 = vpop.xlane.xlu0 %1200  ;;  %1410 = vperm.xlu1 %2261, %v1312_v44   ;;  %v1761_v44 = vld [vmem:[%s2602_s18 + $0x18] sm:$0xff] }
 0x1e8   : > { %v2393_v22 = vpop.eup %2392  ;;  %2400 = vrcp.f32 %v1204_v33  ;;  %v1759_v33 = vld [vmem:[%s2602_s18 + $0x8] sm:$0xff] }
 0x1e9   : > { %2402 = vrcp.f32 %v1201_v25  ;;  %v1313_v13 = vmul.f32 %v2393_v22, %v502_v0  ;;  %v2153_v59 = vpack.c.bf16 %v1761_v44, %v1759_v33  ;;  %v1762_v44 = vld [vmem:[%s2602_s18 + $0x20] sm:$0xff] }
 0x1ea   : > { %v2395_v28 = vpop.eup %2394 }
 0x1eb   : > { %v1210_v52 = vpop.xlane.xlu1 %1209  ;;  %v1207_v5 = vpop.xlane.xlu0 %1206  ;;  %v1314_v17 = vmul.f32 %v2395_v28, %v503_v55  ;;  %1415 = vperm.xlu0 %2260, %v1313_v13   ;;  %v1758_v55 = vld [vmem:[%s2602_s18] sm:$0xff]  ;;  %v507_v13 = vld [vmem:[%s2597_s12 + $0x30] sm:$0xff]  ;;  %2154 = vmatprep.subr.bf16.mxu0 %v2153_v59 }
 0x1ec   : > { %2404 = vrcp.f32 %v1210_v52  ;;  %v1760_v28 = vld [vmem:[%s2602_s18 + $0x10] sm:$0xff]  ;;  %v509_v59 = vld [vmem:[%s2597_s12 + $0x40] sm:$0xff] }
 0x1ed   : > { %2406 = vrcp.f32 %v1207_v5  ;;  %1420 = vperm.xlu1 %2261, %v1314_v17   ;;  %v506_v5 = vld [vmem:[%s2597_s12 + $0x28] sm:$0xff]  ;;  %v2155_v17 = vpack.c.bf16 %v1760_v28, %v1758_v55  ;;  %v508_v55 = vld [vmem:[%s2597_s12 + $0x38] sm:$0xff] }
 0x1ee   : > { %v2397_v48 = vpop.eup %2396  ;;  %v1767_v28 = vld [vmem:[%s2602_s18 + $0x48] sm:$0xff] }
 0x1ef   : > { %v2399_v3 = vpop.eup %2398  ;;  %v1216_v25 = vpop.xlane.xlu1 %1215  ;;  %v1316_v22 = vmul.f32 %v2397_v48, %v505_v6  ;;  %2156 = vmatpush1.bf16.msra.mxu0 %v2155_v17 }
 0x1f0   : > { %v1213_v0 = vpop.xlane.xlu0 %1212  ;;  %2408 = vrcp.f32 %v1216_v25  ;;  %v1315_v52 = vmul.f32 %v2399_v3, %v504_v37  ;;  %v2157_v37 = vpack.c.bf16 %v1765_v15, %v1763_v24  ;;  %v1764_v25 = vld [vmem:[%s2602_s18 + $0x30] sm:$0xff] }
 0x1f1   : > { %2410 = vrcp.f32 %v1213_v0  ;;  %1430 = vperm.xlu0 %2260, %v1316_v22   ;;  %v2159_v22 = vpack.c.bf16 %v1764_v25, %v1762_v44  ;;  %v510_v44 = vld [vmem:[%s2597_s12 + $0x48] sm:$0xff] }
 0x1f2   : > { %v2401_v58 = vpop.eup %2400  ;;  %1425 = vperm.xlu1 %2261, %v1315_v52   ;;  %2158 = vmatprep.subr.bf16.mxu0 %v2157_v37 }
 0x1f3   : > { %v2403_v6 = vpop.eup %2402  ;;  %v1222_v48 = vpop.xlane.xlu1 %1221  ;;  %v1318_v3 = vmul.f32 %v2401_v58, %v507_v13  ;;  %v1769_v58 = vld [vmem:[%s2602_s18 + $0x58] sm:$0xff]  ;;  %2160 = vmatpush1.bf16.msra.mxu0 %v2159_v22 }
 0x1f4   : > { %v1219_v33 = vpop.xlane.xlu0 %1218  ;;  %2412 = vrcp.f32 %v1222_v48  ;;  %v1317_v0 = vmul.f32 %v2403_v6, %v506_v5  ;;  %v2161_v5 = vpack.c.bf16 %v1769_v58, %v1767_v28  ;;  %v1766_v6 = vld [vmem:[%s2602_s18 + $0x40] sm:$0xff]  ;;  %v1768_v48 = vld [vmem:[%s2602_s18 + $0x50] sm:$0xff] }
 0x1f5   : > { %2414 = vrcp.f32 %v1219_v33  ;;  %1440 = vperm.xlu0 %2260, %v1318_v3   ;;  %v511_v3 = vld [vmem:[%s2597_s12 + $0x50] sm:$0xff]  ;;  %v2163_v37 = vpack.c.bf16 %v1768_v48, %v1766_v6  ;;  %v512_v6 = vld [vmem:[%s2597_s12 + $0x58] sm:$0xff] }
 0x1f6   : > { %v2405_v52 = vpop.eup %2404  ;;  %1435 = vperm.xlu1 %2261, %v1317_v0   ;;  %2162 = vmatprep.subr.bf16.mxu0 %v2161_v5  ;;  %v1771_v0 = vld [vmem:[%s2602_s18 + $0x68] sm:$0xff] }
 0x1f7   : > { %v2407_v13 = vpop.eup %2406  ;;  %v1228_v15 = vpop.xlane.xlu1 %1227  ;;  %v1320_v17 = vmul.f32 %v2405_v52, %v509_v59  ;;  %v1773_v59 = vld [vmem:[%s2602_s18 + $0x78] sm:$0xff]  ;;  %2164 = vmatpush1.bf16.msra.mxu0 %v2163_v37 }
 0x1f8   : > { %v1225_v24 = vpop.xlane.xlu0 %1224  ;;  %2416 = vrcp.f32 %v1228_v15  ;;  %v1319_v33 = vmul.f32 %v2407_v13, %v508_v55  ;;  %v2165_v55 = vpack.c.bf16 %v1773_v59, %v1771_v0  ;;  %v1770_v13 = vld [vmem:[%s2602_s18 + $0x60] sm:$0xff]  ;;  %v1772_v15 = vld [vmem:[%s2602_s18 + $0x70] sm:$0xff] }
 0x1f9   : > { %2418 = vrcp.f32 %v1225_v24  ;;  %1450 = vperm.xlu0 %2260, %v1320_v17   ;;  %v513_v17 = vld [vmem:[%s2597_s12 + $0x60] sm:$0xff]  ;;  %v2167_v5 = vpack.c.bf16 %v1772_v15, %v1770_v13  ;;  %v514_v13 = vld [vmem:[%s2597_s12 + $0x68] sm:$0xff] }
 0x1fa   : > { %v2409_v25 = vpop.eup %2408  ;;  %1445 = vperm.xlu1 %2261, %v1319_v33   ;;  %2166 = vmatprep.subr.bf16.mxu0 %v2165_v55  ;;  %v1775_v33 = vld [vmem:[%s2602_s18 + $0x88] sm:$0xff] }
 0x1fb   : > { %v2411_v22 = vpop.eup %2410  ;;  %v1234_v52 = vpop.xlane.xlu1 %1233  ;;  %v1322_v58 = vmul.f32 %v2409_v25, %v511_v3  ;;  %v1777_v3 = vld [vmem:[%s2602_s18 + $0x98] sm:$0xff]  ;;  %2168 = vmatpush1.bf16.msra.mxu0 %v2167_v5 }
 0x1fc   : > { %v1231_v28 = vpop.xlane.xlu0 %1230  ;;  %2420 = vrcp.f32 %v1234_v52  ;;  %v1321_v24 = vmul.f32 %v2411_v22, %v510_v44  ;;  %v2169_v44 = vpack.c.bf16 %v1777_v3, %v1775_v33  ;;  %v1774_v22 = vld [vmem:[%s2602_s18 + $0x80] sm:$0xff]  ;;  %v1776_v52 = vld [vmem:[%s2602_s18 + $0x90] sm:$0xff] }
 0x1fd   : > { %2422 = vrcp.f32 %v1231_v28  ;;  %1460 = vperm.xlu0 %2260, %v1322_v58   ;;  %v515_v58 = vld [vmem:[%s2597_s12 + $0x70] sm:$0xff]  ;;  %v2171_v55 = vpack.c.bf16 %v1776_v52, %v1774_v22  ;;  %v516_v22 = vld [vmem:[%s2597_s12 + $0x78] sm:$0xff] }
 0x1fe   : > { %v2413_v48 = vpop.eup %2412  ;;  %1455 = vperm.xlu1 %2261, %v1321_v24   ;;  %2170 = vmatprep.subr.bf16.mxu0 %v2169_v44  ;;  %v1779_v24 = vld [vmem:[%s2602_s18 + $0xa8] sm:$0xff] }
 0x1ff   : > { %v2415_v37 = vpop.eup %2414  ;;  %v1240_v25 = vpop.xlane.xlu1 %1239  ;;  %v1324_v59 = vmul.f32 %v2413_v48, %v513_v17  ;;  %v1781_v17 = vld [vmem:[%s2602_s18 + $0xb8] sm:$0xff]  ;;  %2172 = vmatpush1.bf16.msra.mxu0 %v2171_v55 }
 0x200   : > { %v1237_v0 = vpop.xlane.xlu0 %1236  ;;  %2424 = vrcp.f32 %v1240_v25  ;;  %v1323_v28 = vmul.f32 %v2415_v37, %v512_v6  ;;  %v2173_v6 = vpack.c.bf16 %v1781_v17, %v1779_v24  ;;  %v1778_v37 = vld [vmem:[%s2602_s18 + $0xa0] sm:$0xff]  ;;  %v1780_v25 = vld [vmem:[%s2602_s18 + $0xb0] sm:$0xff] }
 0x201   : > { %2426 = vrcp.f32 %v1237_v0  ;;  %1470 = vperm.xlu0 %2260, %v1324_v59   ;;  %v517_v59 = vld [vmem:[%s2597_s12 + $0x80] sm:$0xff]  ;;  %v2175_v44 = vpack.c.bf16 %v1780_v25, %v1778_v37  ;;  %v518_v37 = vld [vmem:[%s2597_s12 + $0x88] sm:$0xff] }
 0x202   : > { %v2417_v15 = vpop.eup %2416  ;;  %1465 = vperm.xlu1 %2261, %v1323_v28   ;;  %2174 = vmatprep.subr.bf16.mxu0 %v2173_v6  ;;  %v1783_v28 = vld [vmem:[%s2602_s18 + $0xc8] sm:$0xff] }
 0x203   : > { %v2419_v5 = vpop.eup %2418  ;;  %v1246_v48 = vpop.xlane.xlu1 %1245  ;;  %v1326_v3 = vmul.f32 %v2417_v15, %v515_v58  ;;  %v1785_v58 = vld [vmem:[%s2602_s18 + $0xd8] sm:$0xff]  ;;  %2176 = vmatpush1.bf16.msra.mxu0 %v2175_v44 }
 0x204   : > { %v1243_v33 = vpop.xlane.xlu0 %1242  ;;  %2428 = vrcp.f32 %v1246_v48  ;;  %v1325_v0 = vmul.f32 %v2419_v5, %v514_v13  ;;  %v2177_v13 = vpack.c.bf16 %v1785_v58, %v1783_v28  ;;  %v1782_v5 = vld [vmem:[%s2602_s18 + $0xc0] sm:$0xff]  ;;  %v1784_v48 = vld [vmem:[%s2602_s18 + $0xd0] sm:$0xff] }
 0x205   : > { %2430 = vrcp.f32 %v1243_v33  ;;  %1480 = vperm.xlu0 %2260, %v1326_v3   ;;  %v519_v3 = vld [vmem:[%s2597_s12 + $0x90] sm:$0xff]  ;;  %v2179_v6 = vpack.c.bf16 %v1784_v48, %v1782_v5  ;;  %v520_v5 = vld [vmem:[%s2597_s12 + $0x98] sm:$0xff] }
 0x206   : > { %v2421_v52 = vpop.eup %2420  ;;  %1475 = vperm.xlu1 %2261, %v1325_v0   ;;  %2178 = vmatprep.subr.bf16.mxu0 %v2177_v13  ;;  %v1787_v0 = vld [vmem:[%s2602_s18 + $0xe8] sm:$0xff] }
 0x207   : > { %v2423_v55 = vpop.eup %2422  ;;  %v1252_v15 = vpop.xlane.xlu1 %1251  ;;  %v1328_v17 = vmul.f32 %v2421_v52, %v517_v59  ;;  %v1789_v59 = vld [vmem:[%s2602_s18 + $0xf8] sm:$0xff]  ;;  %2180 = vmatpush1.bf16.msra.mxu0 %v2179_v6 }
 0x208   : > { %v1249_v24 = vpop.xlane.xlu0 %1248  ;;  %2432 = vrcp.f32 %v1252_v15  ;;  %v1327_v33 = vmul.f32 %v2423_v55, %v516_v22  ;;  %v2181_v22 = vpack.c.bf16 %v1789_v59, %v1787_v0  ;;  %v1786_v55 = vld [vmem:[%s2602_s18 + $0xe0] sm:$0xff]  ;;  %v1788_v15 = vld [vmem:[%s2602_s18 + $0xf0] sm:$0xff] }
 0x209   : > { %2434 = vrcp.f32 %v1249_v24  ;;  %1490 = vperm.xlu0 %2260, %v1328_v17   ;;  %v521_v17 = vld [vmem:[%s2597_s12 + $0xa0] sm:$0xff]  ;;  %v2183_v13 = vpack.c.bf16 %v1788_v15, %v1786_v55  ;;  %v522_v55 = vld [vmem:[%s2597_s12 + $0xa8] sm:$0xff] }
 0x20a   : > { %v2425_v25 = vpop.eup %2424  ;;  %1485 = vperm.xlu1 %2261, %v1327_v33   ;;  %2182 = vmatprep.subr.bf16.mxu0 %v2181_v22  ;;  %v1791_v33 = vld [vmem:[%s2602_s18 + $0x108] sm:$0xff] }
 0x20b   : > { %v2427_v44 = vpop.eup %2426  ;;  %v1258_v52 = vpop.xlane.xlu1 %1257  ;;  %v1330_v58 = vmul.f32 %v2425_v25, %v519_v3  ;;  %v1793_v3 = vld [vmem:[%s2602_s18 + $0x118] sm:$0xff]  ;;  %2184 = vmatpush1.bf16.msra.mxu0 %v2183_v13 }
 0x20c   : > { %v1255_v28 = vpop.xlane.xlu0 %1254  ;;  %2436 = vrcp.f32 %v1258_v52  ;;  %v1329_v24 = vmul.f32 %v2427_v44, %v518_v37  ;;  %v2185_v37 = vpack.c.bf16 %v1793_v3, %v1791_v33  ;;  %v1790_v44 = vld [vmem:[%s2602_s18 + $0x100] sm:$0xff]  ;;  %v1792_v52 = vld [vmem:[%s2602_s18 + $0x110] sm:$0xff] }
 0x20d   : > { %2438 = vrcp.f32 %v1255_v28  ;;  %1500 = vperm.xlu0 %2260, %v1330_v58   ;;  %v523_v58 = vld [vmem:[%s2597_s12 + $0xb0] sm:$0xff]  ;;  %v2187_v22 = vpack.c.bf16 %v1792_v52, %v1790_v44  ;;  %v524_v44 = vld [vmem:[%s2597_s12 + $0xb8] sm:$0xff] }
 0x20e   : > { %v2429_v48 = vpop.eup %2428  ;;  %1495 = vperm.xlu1 %2261, %v1329_v24   ;;  %2186 = vmatprep.subr.bf16.mxu0 %v2185_v37  ;;  %v1795_v24 = vld [vmem:[%s2602_s18 + $0x128] sm:$0xff] }
 0x20f   : > { %v2431_v6 = vpop.eup %2430  ;;  %v1264_v25 = vpop.xlane.xlu1 %1263  ;;  %v1332_v59 = vmul.f32 %v2429_v48, %v521_v17  ;;  %v1797_v17 = vld [vmem:[%s2602_s18 + $0x138] sm:$0xff]  ;;  %2188 = vmatpush1.bf16.msra.mxu0 %v2187_v22 }
 0x210   : > { %v1261_v0 = vpop.xlane.xlu0 %1260  ;;  %2440 = vrcp.f32 %v1264_v25  ;;  %v1331_v28 = vmul.f32 %v2431_v6, %v520_v5  ;;  %v2189_v5 = vpack.c.bf16 %v1797_v17, %v1795_v24  ;;  %v1794_v6 = vld [vmem:[%s2602_s18 + $0x120] sm:$0xff]  ;;  %v1796_v25 = vld [vmem:[%s2602_s18 + $0x130] sm:$0xff] }
 0x211   : > { %2442 = vrcp.f32 %v1261_v0  ;;  %1510 = vperm.xlu0 %2260, %v1332_v59   ;;  %v525_v59 = vld [vmem:[%s2597_s12 + $0xc0] sm:$0xff]  ;;  %v2191_v37 = vpack.c.bf16 %v1796_v25, %v1794_v6  ;;  %v526_v6 = vld [vmem:[%s2597_s12 + $0xc8] sm:$0xff] }
 0x212   : > { %v2433_v15 = vpop.eup %2432  ;;  %1505 = vperm.xlu1 %2261, %v1331_v28   ;;  %2190 = vmatprep.subr.bf16.mxu0 %v2189_v5  ;;  %v1799_v28 = vld [vmem:[%s2602_s18 + $0x148] sm:$0xff] }
 0x213   : > { %v2435_v13 = vpop.eup %2434  ;;  %v1270_v48 = vpop.xlane.xlu1 %1269  ;;  %v1334_v3 = vmul.f32 %v2433_v15, %v523_v58  ;;  %v1801_v58 = vld [vmem:[%s2602_s18 + $0x158] sm:$0xff]  ;;  %2192 = vmatpush1.bf16.msra.mxu0 %v2191_v37 }
 0x214   : > { %v1267_v33 = vpop.xlane.xlu0 %1266  ;;  %2444 = vrcp.f32 %v1270_v48  ;;  %v1333_v0 = vmul.f32 %v2435_v13, %v522_v55  ;;  %v2193_v55 = vpack.c.bf16 %v1801_v58, %v1799_v28  ;;  %v1798_v13 = vld [vmem:[%s2602_s18 + $0x140] sm:$0xff]  ;;  %v1800_v48 = vld [vmem:[%s2602_s18 + $0x150] sm:$0xff] }
 0x215   : > { %2446 = vrcp.f32 %v1267_v33  ;;  %1520 = vperm.xlu0 %2260, %v1334_v3   ;;  %v527_v3 = vld [vmem:[%s2597_s12 + $0xd0] sm:$0xff]  ;;  %v2195_v5 = vpack.c.bf16 %v1800_v48, %v1798_v13  ;;  %v1802_v58 = vld [vmem:[%s2602_s18 + $0x160] sm:$0xff]  ;;  %v1807_v48 = vld [vmem:[%s2602_s18 + $0x188] sm:$0xff] }
 0x216   : > { %v2437_v52 = vpop.eup %2436  ;;  %1515 = vperm.xlu1 %2261, %v1333_v0   ;;  %2194 = vmatprep.subr.bf16.mxu0 %v2193_v55  ;;  %v1803_v0 = vld [vmem:[%s2602_s18 + $0x168] sm:$0xff]  ;;  %v528_v55 = vld [vmem:[%s2597_s12 + $0xd8] sm:$0xff] }
 0x217   : > { %v2439_v22 = vpop.eup %2438  ;;  %v1276_v15 = vpop.xlane.xlu1 %1275  ;;  %v1336_v17 = vmul.f32 %v2437_v52, %v525_v59  ;;  %v1805_v59 = vld [vmem:[%s2602_s18 + $0x178] sm:$0xff]  ;;  %2196 = vmatpush1.bf16.msra.mxu0 %v2195_v5 }
 0x218   : > { %v1273_v24 = vpop.xlane.xlu0 %1272  ;;  %2448 = vrcp.f32 %v1276_v15  ;;  %v1335_v33 = vmul.f32 %v2439_v22, %v524_v44  ;;  %v2197_v44 = vpack.c.bf16 %v1805_v59, %v1803_v0  ;;  %v1804_v22 = vld [vmem:[%s2602_s18 + $0x170] sm:$0xff]  ;;  %v1806_v0 = vld [vmem:[%s2602_s18 + $0x180] sm:$0xff] }
 0x219   : > { %2450 = vrcp.f32 %v1273_v24  ;;  %1530 = vperm.xlu0 %2260, %v1336_v17   ;;  %v529_v24 = vld [vmem:[%s2597_s12 + $0xe0] sm:$0xff]  ;;  %v2199_v17 = vpack.c.bf16 %v1804_v22, %v1802_v58  ;;  %v1811_v58 = vld [vmem:[%s2602_s18 + $0x1a8] sm:$0xff]  ;;  %v1813_v22 = vld [vmem:[%s2602_s18 + $0x1b8] sm:$0xff] }
 0x21a   : > { %v2441_v25 = vpop.eup %2440  ;;  %1525 = vperm.xlu1 %2261, %v1335_v33   ;;  %2198 = vmatprep.subr.bf16.mxu0 %v2197_v44  ;;  %v1809_v33 = vld [vmem:[%s2602_s18 + $0x198] sm:$0xff] }
 0x21b   : > { %v2443_v37 = vpop.eup %2442  ;;  %v1338_v28 = vmul.f32 %v2441_v25, %v527_v3  ;;  %2200 = vmatpush1.bf16.msra.mxu0 %v2199_v17  ;;  %v2201_v25 = vpack.c.bf16 %v1809_v33, %v1807_v48  ;;  %v2205_v17 = vpack.c.bf16 %v1813_v22, %v1811_v58  ;;  %v532_v33 = vld [vmem:[%s2597_s12 + $0xf8] sm:$0xff] }
 0x21c   : > { %v1279_v52 = vpop.xlane.xlu0 %1278  ;;  %v1337_v15 = vmul.f32 %v2443_v37, %v526_v6  ;;  %v1808_v6 = vld [vmem:[%s2602_s18 + $0x190] sm:$0xff]  ;;  %v1821_v58 = vld [vmem:[%s2602_s18 + $0x1f8] sm:$0xff] }
 0x21d   : > { %2452 = vrcp.f32 %v1279_v52  ;;  %1540 = vperm.xlu0 %2260, %v1338_v28   ;;  %v531_v37 = vld [vmem:[%s2597_s12 + $0xf0] sm:$0xff]  ;;  %v2203_v52 = vpack.c.bf16 %v1808_v6, %v1806_v0  ;;  %v530_v28 = vld [vmem:[%s2597_s12 + $0xe8] sm:$0xff]  ;;  %2202 = vmatprep.subr.bf16.mxu0 %v2201_v25  ;;  %v1817_v0 = vld [vmem:[%s2602_s18 + $0x1d8] sm:$0xff] }
 0x21e   : > { %v2445_v13 = vpop.eup %2444  ;;  %1535 = vperm.xlu1 %2261, %v1337_v15   ;;  %v1815_v25 = vld [vmem:[%s2602_s18 + $0x1c8] sm:$0xff] }
 0x21f   : > { %v2447_v3 = vpop.eup %2446  ;;  %v1340_v5 = vmul.f32 %v2445_v13, %v529_v24  ;;  %2204 = vmatpush1.bf16.msra.mxu0 %v2203_v52  ;;  %v1810_v13 = vld [vmem:[%s2602_s18 + $0x1a0] sm:$0xff]  ;;  %v1816_v52 = vld [vmem:[%s2602_s18 + $0x1d0] sm:$0xff] }
 0x220   : > { %v1339_v59 = vmul.f32 %v2447_v3, %v528_v55  ;;  %v1812_v55 = vld [vmem:[%s2602_s18 + $0x1b0] sm:$0xff]  ;;  %2206 = vmatprep.subr.bf16.mxu0 %v2205_v17 }
 0x221   : > { %1550 = vperm.xlu0 %2260, %v1340_v5   ;;  %v2207_v3 = vpack.c.bf16 %v1812_v55, %v1810_v13  ;;  %v1344_v13 = vld [vmem:[%s3767_s4] sm:$0xff]  ;;  %v1345_v55 = vld [vmem:[%s3767_s4 + $0x8] sm:$0xff] }
 0x222   : > { %v2449_v44 = vpop.eup %2448  ;;  %1545 = vperm.xlu1 %2261, %v1339_v59   ;;  %v2209_v59 = vpack.c.bf16 %v1817_v0, %v1815_v25  ;;  %v1347_v25 = vld [vmem:[%s3767_s4 + $0x18] sm:$0xff]  ;;  %v1348_v0 = vld [vmem:[%s3767_s4 + $0x20] sm:$0xff] }
 0x223   : > { %v2451_v15 = vpop.eup %2450  ;;  %v1342_v24 = vmul.f32 %v2449_v44, %v531_v37  ;;  %2208 = vmatpush1.bf16.msra.mxu0 %v2207_v3  ;;  %v1814_v37 = vld [vmem:[%s2602_s18 + $0x1c0] sm:$0xff] }
 0x224   : > { %v1341_v48 = vmul.f32 %v2451_v15, %v530_v28  ;;  %v2211_v44 = vpack.c.bf16 %v1816_v52, %v1814_v37  ;;  %2210 = vmatprep.subr.bf16.mxu0 %v2209_v59  ;;  %v1819_v28 = vld [vmem:[%s2602_s18 + $0x1e8] sm:$0xff]  ;;  %v1818_v15 = vld [vmem:[%s2602_s18 + $0x1e0] sm:$0xff] }
 0x225   : > { %1560 = vperm.xlu0 %2260, %v1342_v24   ;;  %v2213_v22 = vpack.c.bf16 %v1821_v58, %v1819_v28  ;;  %v1820_v24 = vld [vmem:[%s2602_s18 + $0x1f0] sm:$0xff] }
 0x226   : > { %1555 = vperm.xlu1 %2261, %v1341_v48   ;;  %v2215_v17 = vpack.c.bf16 %v1820_v24, %v1818_v15 }
 0x227   : > { %v2453_v5 = vpop.eup %2452  ;;  %2212 = vmatpush1.bf16.msra.mxu0 %v2211_v44 }
 0x228   : > { %v1343_v6 = vmul.f32 %v2453_v5, %v532_v33  ;;  %2214 = vmatprep.subr.bf16.mxu0 %v2213_v22  ;;  %v1346_v5 = vld [vmem:[%s3767_s4 + $0x10] sm:$0xff] }
 0x22a   : > { %1565 = vperm.xlu1 %2261, %v1343_v6   ;;  %v1349_v6 = vld [vmem:[%s3767_s4 + $0x28] sm:$0xff] }
 0x22b   : > { %2216 = vmatpush1.bf16.msra.mxu0 %v2215_v17 }
 0x266   : > { %v1411_v48 = vpop.permute.xlu1 %1410 }
 0x267   : > { %v1568_v33 = vmul.f32 %v1411_v48, %v1344_v13  ;;  %v1569_v3 = vmul.f32 %v1411_v48, %v1345_v55  ;;  %v1352_v13 = vld [vmem:[%s3767_s4 + $0x40] sm:$0xff]  ;;  %v1353_v55 = vld [vmem:[%s3767_s4 + $0x48] sm:$0xff] }
 0x269   : > { %v1632_v44 = vmul.f32 %v3129_v30, %v1568_v33  ;;  %v1633_v28 = vmul.f32 %v3131_v39, %v1569_v3  ;;  %v1350_v30 = vld [vmem:[%s3767_s4 + $0x30] sm:$0xff]  ;;  %v1351_v39 = vld [vmem:[%s3767_s4 + $0x38] sm:$0xff] }
 0x26a   : > { %v1416_v59 = vpop.permute.xlu0 %1415 }
 0x26b   : > { %v1570_v37 = vmul.f32 %v1416_v59, %v1346_v5  ;;  %v1571_v52 = vmul.f32 %v1416_v59, %v1347_v25 }
 0x26c   : > { %v1421_v58 = vpop.permute.xlu1 %1420 }
 0x26d   : > { %v1572_v22 = vmul.f32 %v1421_v58, %v1348_v0  ;;  %v1573_v15 = vmul.f32 %v1421_v58, %v1349_v6  ;;  %v1634_v24 = vmul.f32 %v3139_v56, %v1570_v37  ;;  %v1635_v17 = vmul.f32 %v3141_v7, %v1571_v52 }
 0x26f   : > { %v1696_v48 = vadd.f32 %v1634_v24, %v1632_v44  ;;  %v1727_v5 = vadd.f32 %v1635_v17, %v1633_v28  ;;  %v1636_v56 = vmul.f32 %v3143_v62, %v1572_v22  ;;  %v1637_v7 = vmul.f32 %v3148_v61, %v1573_v15  ;;  %v1356_v44 = vld [vmem:[%s3767_s4 + $0x60] sm:$0xff]  ;;  %v1357_v28 = vld [vmem:[%s3767_s4 + $0x68] sm:$0xff]  ;;  %v1354_v62 = vld [vmem:[%s3767_s4 + $0x50] sm:$0xff] }
 0x270   : > { %v1431_v33 = vpop.permute.xlu0 %1430  ;;  %v1355_v61 = vld [vmem:[%s3767_s4 + $0x58] sm:$0xff] }
 0x271   : > { %v1426_v3 = vpop.permute.xlu1 %1425  ;;  %v1576_v25 = vmul.f32 %v1431_v33, %v1352_v13  ;;  %v1577_v0 = vmul.f32 %v1431_v33, %v1353_v55  ;;  %v1697_v37 = vadd.f32 %v1696_v48, %v1636_v56  ;;  %v1728_v52 = vadd.f32 %v1727_v5, %v1637_v7  ;;  %v1360_v7 = vld [vmem:[%s3767_s4 + $0x80] sm:$0xff] }
 0x272   : > { %v1574_v6 = vmul.f32 %v1426_v3, %v1350_v30  ;;  %v1575_v59 = vmul.f32 %v1426_v3, %v1351_v39 }
 0x273   : > { %v1640_v24 = vmul.f32 %v3153_v53, %v1576_v25  ;;  %v1641_v17 = vmul.f32 %v3155_v12, %v1577_v0  ;;  %v1358_v53 = vld [vmem:[%s3767_s4 + $0x70] sm:$0xff]  ;;  %v1359_v12 = vld [vmem:[%s3767_s4 + $0x78] sm:$0xff] }
 0x274   : > { %v1638_v58 = vmul.f32 %v3159_v11, %v1574_v6  ;;  %v1639_v22 = vmul.f32 %v3164_v26, %v1575_v59  ;;  %v1441_v15 = vpop.permute.xlu0 %1440  ;;  %v1361_v11 = vld [vmem:[%s3767_s4 + $0x88] sm:$0xff] }
 0x275   : > { %v1436_v13 = vpop.permute.xlu1 %1435  ;;  %v1580_v55 = vmul.f32 %v1441_v15, %v1356_v44  ;;  %v1581_v48 = vmul.f32 %v1441_v15, %v1357_v28 }
 0x276   : > { %v1698_v5 = vadd.f32 %v1697_v37, %v1638_v58  ;;  %v1729_v30 = vadd.f32 %v1728_v52, %v1639_v22  ;;  %v1578_v39 = vmul.f32 %v1436_v13, %v1354_v62  ;;  %v1579_v56 = vmul.f32 %v1436_v13, %v1355_v61  ;;  %v1364_v22 = vld [vmem:[%s3767_s4 + $0xa0] sm:$0xff] }
 0x277   : > { %v1644_v6 = vmul.f32 %v3169_v31, %v1580_v55  ;;  %v1645_v59 = vmul.f32 %v3171_v49, %v1581_v48  ;;  %v1362_v31 = vld [vmem:[%s3767_s4 + $0x90] sm:$0xff]  ;;  %v1363_v49 = vld [vmem:[%s3767_s4 + $0x98] sm:$0xff] }
 0x278   : > { %v1699_v26 = vadd.f32 %v1698_v5, %v1640_v24  ;;  %v1730_v33 = vadd.f32 %v1729_v30, %v1641_v17  ;;  %v1642_v3 = vmul.f32 %v3175_v29, %v1578_v39  ;;  %v1643_v25 = vmul.f32 %v3180_v8, %v1579_v56  ;;  %v1451_v0 = vpop.permute.xlu0 %1450  ;;  %v1365_v29 = vld [vmem:[%s3767_s4 + $0xa8] sm:$0xff] }
 0x279   : > { %v1446_v37 = vpop.permute.xlu1 %1445  ;;  %v1584_v52 = vmul.f32 %v1451_v0, %v1360_v7  ;;  %v1585_v44 = vmul.f32 %v1451_v0, %v1361_v11 }
 0x27a   : > { %v1700_v28 = vadd.f32 %v1699_v26, %v1642_v3  ;;  %v1731_v62 = vadd.f32 %v1730_v33, %v1643_v25  ;;  %v1582_v61 = vmul.f32 %v1446_v37, %v1358_v53  ;;  %v1583_v58 = vmul.f32 %v1446_v37, %v1359_v12  ;;  %v1368_v12 = vld [vmem:[%s3767_s4 + $0xc0] sm:$0xff] }
 0x27b   : > { %v1648_v55 = vmul.f32 %v3185_v36, %v1584_v52  ;;  %v1649_v48 = vmul.f32 %v3187_v54, %v1585_v44  ;;  %v1366_v36 = vld [vmem:[%s3767_s4 + $0xb0] sm:$0xff]  ;;  %v1367_v54 = vld [vmem:[%s3767_s4 + $0xb8] sm:$0xff] }
 0x27c   : > { %v1701_v8 = vadd.f32 %v1700_v28, %v1644_v6  ;;  %v1732_v15 = vadd.f32 %v1731_v62, %v1645_v59  ;;  %v1646_v24 = vmul.f32 %v3191_v21, %v1582_v61  ;;  %v1647_v17 = vmul.f32 %v3196_v16, %v1583_v58  ;;  %v1461_v13 = vpop.permute.xlu0 %1460  ;;  %v1369_v21 = vld [vmem:[%s3767_s4 + $0xc8] sm:$0xff]  ;;  %v1372_v58 = vld [vmem:[%s3767_s4 + $0xe0] sm:$0xff] }
 0x27d   : > { %v1456_v5 = vpop.permute.xlu1 %1455  ;;  %v1588_v30 = vmul.f32 %v1461_v13, %v1364_v22  ;;  %v1589_v39 = vmul.f32 %v1461_v13, %v1365_v29 }
 0x27e   : > { %v1702_v56 = vadd.f32 %v1701_v8, %v1646_v24  ;;  %v1733_v7 = vadd.f32 %v1732_v15, %v1647_v17  ;;  %v1586_v11 = vmul.f32 %v1456_v5, %v1362_v31  ;;  %v1587_v53 = vmul.f32 %v1456_v5, %v1363_v49 }
 0x27f   : > { %v1652_v0 = vmul.f32 %v3201_v40, %v1588_v30  ;;  %v1653_v6 = vmul.f32 %v3203_v46, %v1589_v39  ;;  %v1370_v40 = vld [vmem:[%s3767_s4 + $0xd0] sm:$0xff]  ;;  %v1371_v46 = vld [vmem:[%s3767_s4 + $0xd8] sm:$0xff]  ;;  %v1376_v39 = vld [vmem:[%s3767_s4 + $0x100] sm:$0xff] }
 0x280   : > { %v1703_v16 = vadd.f32 %v1702_v56, %v1648_v55  ;;  %v1734_v26 = vadd.f32 %v1733_v7, %v1649_v48  ;;  %v1650_v33 = vmul.f32 %v3207_v50, %v1586_v11  ;;  %v1651_v3 = vmul.f32 %v3212_v38, %v1587_v53  ;;  %v1471_v25 = vpop.permute.xlu0 %1470  ;;  %v1373_v50 = vld [vmem:[%s3767_s4 + $0xe8] sm:$0xff] }
 0x281   : > { %v1466_v59 = vpop.permute.xlu1 %1465  ;;  %v1592_v37 = vmul.f32 %v1471_v25, %v1368_v12  ;;  %v1593_v52 = vmul.f32 %v1471_v25, %v1369_v21 }
 0x282   : > { %v1704_v44 = vadd.f32 %v1703_v16, %v1650_v33  ;;  %v1735_v28 = vadd.f32 %v1734_v26, %v1651_v3  ;;  %v1590_v62 = vmul.f32 %v1466_v59, %v1366_v36  ;;  %v1591_v61 = vmul.f32 %v1466_v59, %v1367_v54 }
 0x283   : > { %v1656_v8 = vmul.f32 %v3217_v2, %v1592_v37  ;;  %v1657_v15 = vmul.f32 %v3219_v34, %v1593_v52  ;;  %v1374_v2 = vld [vmem:[%s3767_s4 + $0xf0] sm:$0xff]  ;;  %v1375_v34 = vld [vmem:[%s3767_s4 + $0xf8] sm:$0xff] }
 0x284   : > { %v1705_v38 = vadd.f32 %v1704_v44, %v1652_v0  ;;  %v1736_v22 = vadd.f32 %v1735_v28, %v1653_v6  ;;  %v1654_v29 = vmul.f32 %v3223_v9, %v1590_v62  ;;  %v1655_v31 = vmul.f32 %v3228_v10, %v1591_v61  ;;  %v1481_v49 = vpop.permute.xlu0 %1480  ;;  %v1377_v9 = vld [vmem:[%s3767_s4 + $0x108] sm:$0xff]  ;;  %v1380_v0 = vld [vmem:[%s3767_s4 + $0x120] sm:$0xff] }
 0x285   : > { %v1476_v24 = vpop.permute.xlu1 %1475  ;;  %v1596_v17 = vmul.f32 %v1481_v49, %v1372_v58  ;;  %v1597_v13 = vmul.f32 %v1481_v49, %v1373_v50  ;;  %v3873_v37 = vld [vmem:[#allocation15_spill] sm:$0xff]  ;;  %v3875_v61 = vld [vmem:[#allocation12_spill] sm:$0xff] }
 0x286   : > { %v1706_v55 = vadd.f32 %v1705_v38, %v1654_v29  ;;  %v1737_v48 = vadd.f32 %v1736_v22, %v1655_v31  ;;  %v1594_v5 = vmul.f32 %v1476_v24, %v1370_v40  ;;  %v1595_v30 = vmul.f32 %v1476_v24, %v1371_v46  ;;  %v3874_v28 = vld [vmem:[#allocation11_spill] sm:$0xff] }
 0x287   : > { %v1660_v12 = vmul.f32 %v3233_v45, %v1596_v17  ;;  %v1661_v21 = vmul.f32 %v3235_v41, %v1597_v13  ;;  %v1378_v45 = vld [vmem:[%s3767_s4 + $0x110] sm:$0xff]  ;;  %v1379_v41 = vld [vmem:[%s3767_s4 + $0x118] sm:$0xff]  ;;  %v1384_v49 = vld [vmem:[%s3767_s4 + $0x140] sm:$0xff] }
 0x288   : > { %v1707_v10 = vadd.f32 %v1706_v55, %v1656_v8  ;;  %v1738_v56 = vadd.f32 %v1737_v48, %v1657_v15  ;;  %v1658_v7 = vmul.f32 %v3239_v35, %v1594_v5  ;;  %v1659_v11 = vmul.f32 %v3244_v60, %v1595_v30  ;;  %v1491_v53 = vpop.permute.xlu0 %1490  ;;  %v1381_v35 = vld [vmem:[%s3767_s4 + $0x128] sm:$0xff]  ;;  %v1382_v8 = vld [vmem:[%s3767_s4 + $0x130] sm:$0xff]  ;;  %v1383_v15 = vld [vmem:[%s3767_s4 + $0x138] sm:$0xff] }
 0x289   : > { %v1486_v36 = vpop.permute.xlu1 %1485  ;;  %v1600_v54 = vmul.f32 %v1491_v53, %v1376_v39  ;;  %v1601_v16 = vmul.f32 %v1491_v53, %v1377_v9 }
 0x28a   : > { %v1708_v26 = vadd.f32 %v1707_v10, %v1658_v7  ;;  %v1739_v33 = vadd.f32 %v1738_v56, %v1659_v11  ;;  %v1598_v3 = vmul.f32 %v1486_v36, %v1374_v2  ;;  %v1599_v25 = vmul.f32 %v1486_v36, %v1375_v34  ;;  %v1388_v11 = vld [vmem:[%s3767_s4 + $0x160] sm:$0xff] }
 0x28b   : > { %v1664_v62 = vmul.f32 %v3874_v28, %v1600_v54  ;;  %v1665_v58 = vmul.f32 %v3875_v61, %v1601_v16 }
 0x28c   : > { %v1709_v60 = vadd.f32 %v1708_v26, %v1660_v12  ;;  %v1740_v6 = vadd.f32 %v1739_v33, %v1661_v21  ;;  %v1662_v59 = vmul.f32 %v3255_v51, %v1598_v3  ;;  %v1663_v52 = vmul.f32 %v3873_v37, %v1599_v25  ;;  %v1501_v44 = vpop.permute.xlu0 %1500  ;;  %v1385_v51 = vld [vmem:[%s3767_s4 + $0x148] sm:$0xff] }
 0x28d   : > { %v1496_v50 = vpop.permute.xlu1 %1495  ;;  %v1604_v40 = vmul.f32 %v1501_v44, %v1380_v0  ;;  %v1605_v46 = vmul.f32 %v1501_v44, %v1381_v35 }
 0x28e   : > { %v1710_v38 = vadd.f32 %v1709_v60, %v1662_v59  ;;  %v1741_v22 = vadd.f32 %v1740_v6, %v1663_v52  ;;  %v1602_v29 = vmul.f32 %v1496_v50, %v1378_v45  ;;  %v1603_v31 = vmul.f32 %v1496_v50, %v1379_v41  ;;  %v1392_v41 = vld [vmem:[%s3767_s4 + $0x180] sm:$0xff] }
 0x28f   : > { %v1668_v5 = vmul.f32 %v3265_v1, %v1604_v40  ;;  %v1669_v30 = vmul.f32 %v3267_v14, %v1605_v46  ;;  %v1386_v1 = vld [vmem:[%s3767_s4 + $0x150] sm:$0xff]  ;;  %v1387_v14 = vld [vmem:[%s3767_s4 + $0x158] sm:$0xff] }
 0x290   : > { %v1711_v24 = vadd.f32 %v1710_v38, %v1664_v62  ;;  %v1742_v17 = vadd.f32 %v1741_v22, %v1665_v58  ;;  %v1666_v13 = vmul.f32 %v3271_v43, %v1602_v29  ;;  %v1667_v55 = vmul.f32 %v3276_v42, %v1603_v31  ;;  %v1511_v48 = vpop.permute.xlu0 %1510  ;;  %v1389_v43 = vld [vmem:[%s3767_s4 + $0x168] sm:$0xff]  ;;  %v1396_v38 = vld [vmem:[%s3767_s4 + $0x1a0] sm:$0xff] }
 0x291   : > { %v1506_v39 = vpop.permute.xlu1 %1505  ;;  %v1608_v9 = vmul.f32 %v1511_v48, %v1384_v49  ;;  %v1609_v2 = vmul.f32 %v1511_v48, %v1385_v51  ;;  %v3876_v51 = vld [vmem:[#allocation16_spill] sm:$0xff] }
 0x292   : > { %v1712_v34 = vadd.f32 %v1711_v24, %v1666_v13  ;;  %v1743_v10 = vadd.f32 %v1742_v17, %v1667_v55  ;;  %v1606_v56 = vmul.f32 %v1506_v39, %v1382_v8  ;;  %v1607_v7 = vmul.f32 %v1506_v39, %v1383_v15  ;;  %v3877_v15 = vld [vmem:[#allocation13_spill] sm:$0xff] }
 0x293   : > { %v1672_v54 = vmul.f32 %v3281_v23, %v1608_v9  ;;  %v1673_v16 = vmul.f32 %v3283_v32, %v1609_v2  ;;  %v1390_v23 = vld [vmem:[%s3767_s4 + $0x170] sm:$0xff]  ;;  %v1391_v32 = vld [vmem:[%s3767_s4 + $0x178] sm:$0xff]  ;;  %v1400_v9 = vld [vmem:[%s3767_s4 + $0x1c0] sm:$0xff] }
 0x294   : > { %v1713_v42 = vadd.f32 %v1712_v34, %v1668_v5  ;;  %v1744_v53 = vadd.f32 %v1743_v10, %v1669_v30  ;;  %v1670_v12 = vmul.f32 %v3287_v4, %v1606_v56  ;;  %v1671_v21 = vmul.f32 %v3292_v47, %v1607_v7  ;;  %v1521_v36 = vpop.permute.xlu0 %1520  ;;  %v1393_v4 = vld [vmem:[%s3767_s4 + $0x188] sm:$0xff]  ;;  %v1399_v2 = vld [vmem:[%s3767_s4 + $0x1b8] sm:$0xff] }
 0x295   : > { %v1516_v26 = vpop.permute.xlu1 %1515  ;;  %v1612_v33 = vmul.f32 %v1521_v36, %v1388_v11  ;;  %v1613_v3 = vmul.f32 %v1521_v36, %v1389_v43  ;;  %v3878_v56 = vld [vmem:[#allocation20_spill] sm:$0xff]  ;;  %v3879_v11 = vld [vmem:[#allocation17_spill] sm:$0xff] }
 0x296   : > { %v1714_v25 = vadd.f32 %v1713_v42, %v1670_v12  ;;  %v1745_v0 = vadd.f32 %v1744_v53, %v1671_v21  ;;  %v1610_v35 = vmul.f32 %v1516_v26, %v1386_v1  ;;  %v1611_v45 = vmul.f32 %v1516_v26, %v1387_v14  ;;  %v3880_v14 = vld [vmem:[#allocation14_spill] sm:$0xff]  ;;  %v3881_v53 = vld [vmem:[#allocation19_spill] sm:$0xff] }
 0x297   : > { %v1676_v52 = vmul.f32 %v3297_v19, %v1612_v33  ;;  %v1677_v44 = vmul.f32 %v3299_v63, %v1613_v3  ;;  %v1394_v19 = vld [vmem:[%s3767_s4 + $0x190] sm:$0xff]  ;;  %v1395_v63 = vld [vmem:[%s3767_s4 + $0x198] sm:$0xff] }
 0x298   : > { %v1715_v47 = vadd.f32 %v1714_v25, %v1672_v54  ;;  %v1746_v60 = vadd.f32 %v1745_v0, %v1673_v16  ;;  %v1674_v6 = vmul.f32 %v3303_v20, %v1610_v35  ;;  %v1675_v59 = vmul.f32 %v3308_v18, %v1611_v45  ;;  %v1531_v37 = vpop.permute.xlu0 %1530  ;;  %v1397_v20 = vld [vmem:[%s3767_s4 + $0x1a8] sm:$0xff]  ;;  %v1404_v25 = vld [vmem:[%s3767_s4 + $0x1e0] sm:$0xff]  ;;  %v1402_v35 = vld [vmem:[%s3767_s4 + $0x1d0] sm:$0xff] }
 0x299   : > { %v1526_v28 = vpop.permute.xlu1 %1525  ;;  %v1616_v62 = vmul.f32 %v1531_v37, %v1392_v41  ;;  %v1617_v61 = vmul.f32 %v1531_v37, %v1393_v4  ;;  %v1405_v0 = vld [vmem:[%s3767_s4 + $0x1e8] sm:$0xff]  ;;  %v1403_v45 = vld [vmem:[%s3767_s4 + $0x1d8] sm:$0xff] }
 0x29a   : > { %v1716_v58 = vadd.f32 %v1715_v47, %v1674_v6  ;;  %v1747_v50 = vadd.f32 %v1746_v60, %v1675_v59  ;;  %v1614_v40 = vmul.f32 %v1526_v28, %v1390_v23  ;;  %v1615_v46 = vmul.f32 %v1526_v28, %v1391_v32  ;;  %v3882_v23 = vld [vmem:[#allocation24_spill] sm:$0xff]  ;;  %v3883_v47 = vld [vmem:[#allocation21_spill] sm:$0xff]  ;;  %v3884_v59 = vld [vmem:[#allocation18_spill] sm:$0xff] }
 0x29b   : > { %v1680_v8 = vmul.f32 %v3876_v51, %v1616_v62  ;;  %v1681_v24 = vmul.f32 %v3877_v15, %v1617_v61 }
 0x29c   : > { %v1717_v18 = vadd.f32 %v1716_v58, %v1676_v52  ;;  %v1748_v22 = vadd.f32 %v1747_v50, %v1677_v44  ;;  %v1678_v29 = vmul.f32 %v3319_v27, %v1614_v40  ;;  %v1679_v31 = vmul.f32 %v3323_v57, %v1615_v46  ;;  %v1541_v49 = vpop.permute.xlu0 %1540  ;;  %v1401_v27 = vld [vmem:[%s3767_s4 + $0x1c8] sm:$0xff]  ;;  %v1398_v57 = vld [vmem:[%s3767_s4 + $0x1b0] sm:$0xff]  ;;  %v3885_v52 = vld [vmem:[#allocation23_spill] sm:$0xff] }
 0x29d   : > { %v1536_v17 = vpop.permute.xlu1 %1535  ;;  %v1620_v13 = vmul.f32 %v1541_v49, %v1396_v38  ;;  %v1621_v55 = vmul.f32 %v1541_v49, %v1397_v20  ;;  %v1406_v38 = vld [vmem:[%s3767_s4 + $0x1f0] sm:$0xff]  ;;  %v1407_v20 = vld [vmem:[%s3767_s4 + $0x1f8] sm:$0xff] }
 0x29e   : > { %v1718_v48 = vadd.f32 %v1717_v18, %v1678_v29  ;;  %v1749_v5 = vadd.f32 %v1748_v22, %v1679_v31  ;;  %v1618_v30 = vmul.f32 %v1536_v17, %v1394_v19  ;;  %v1619_v39 = vmul.f32 %v1536_v17, %v1395_v63  ;;  %v3886_v18 = vld [vmem:[#allocation26_spill] sm:$0xff]  ;;  %v3887_v29 = vld [vmem:[#allocation27_spill] sm:$0xff] }
 0x29f   : > { %v1684_v42 = vmul.f32 %v3880_v14, %v1620_v13  ;;  %v1685_v12 = vmul.f32 %v3881_v53, %v1621_v55  ;;  %v3888_v49 = vld [vmem:[#allocation22_spill] sm:$0xff]  ;;  %v2498_v14 = vmov 1966171168  }
 0x2a0   : > { %v1719_v34 = vadd.f32 %v1718_v48, %v1680_v8  ;;  %v1750_v10 = vadd.f32 %v1749_v5, %v1681_v24  ;;  %v1682_v7 = vmul.f32 %v3878_v56, %v1618_v30  ;;  %v1683_v43 = vmul.f32 %v3879_v11, %v1619_v39  ;;  %v1551_v1 = vpop.permute.xlu0 %1550  ;;  %v3889_v8 = vld [vmem:[#allocation25_spill] sm:$0xff]  ;;  %v3890_v30 = vld [vmem:[#allocation28_spill] sm:$0xff] }
 0x2a1   : > { %v1546_v21 = vpop.permute.xlu1 %1545  ;;  %v1624_v36 = vmul.f32 %v1551_v1, %v1400_v9  ;;  %v1625_v54 = vmul.f32 %v1551_v1, %v1401_v27  ;;  %v3891_v9 = vld [vmem:[#allocation29_spill] sm:$0xff] }
 0x2a2   : > { %v1720_v16 = vadd.f32 %v1719_v34, %v1682_v7  ;;  %v1751_v26 = vadd.f32 %v1750_v10, %v1683_v43  ;;  %v1622_v33 = vmul.f32 %v1546_v21, %v1398_v57  ;;  %v1623_v3 = vmul.f32 %v1546_v21, %v1399_v2 }
 0x2a3   : > { %v1688_v37 = vmul.f32 %v3884_v59, %v1624_v36  ;;  %v1689_v44 = vmul.f32 %v3885_v52, %v1625_v54 }
 0x2a4   : > { %v1721_v41 = vadd.f32 %v1720_v16, %v1684_v42  ;;  %v1752_v4 = vadd.f32 %v1751_v26, %v1685_v12  ;;  %v1686_v32 = vmul.f32 %v3882_v23, %v1622_v33  ;;  %v1687_v60 = vmul.f32 %v3883_v47, %v1623_v3  ;;  %v1561_v6 = vpop.permute.xlu0 %1560 }
 0x2a5   : > { %v1556_v28 = vpop.permute.xlu1 %1555  ;;  %v1628_v62 = vmul.f32 %v1561_v6, %v1404_v25  ;;  %v1629_v61 = vmul.f32 %v1561_v6, %v1405_v0  ;;  %v1910_v42 = vunpack.c.l.s4 %v2498_v14  ;;  %v3892_v25 = vld [vmem:[#allocation8_spill] sm:$0xff]  ;;  %v3893_v23 = vlaneseq }
 0x2a6   : > { %v1722_v58 = vadd.f32 %v1721_v41, %v1686_v32  ;;  %v1753_v50 = vadd.f32 %v1752_v4, %v1687_v60  ;;  %v1626_v40 = vmul.f32 %v1556_v28, %v1402_v35  ;;  %v1627_v46 = vmul.f32 %v1556_v28, %v1403_v45  ;;  %v1893_v41 = vld [vmem:[#allocation2] sm:$0x3] }
 0x2a7   : > { %v1692_v51 = vmul.f32 %v3888_v49, %v1628_v62  ;;  %v1693_v15 = vmul.f32 %v3889_v8, %v1629_v61  ;;  %v1911_v54 = vunpack.c.0.s8 %v1910_v42  ;;  %vm3725_vm1 = vcmp.lt.s32.totalorder %v3893_v23, 256  ;;  %v1934_v60 = vld [vmem:[%s2607_s22] sm:$0x3] (!%p2149_p8) }
 0x2a8   : > { %v1723_v19 = vadd.f32 %v1722_v58, %v1688_v37  ;;  %v1754_v63 = vadd.f32 %v1753_v50, %v1689_v44  ;;  %v1690_v22 = vmul.f32 %v3886_v18, %v1626_v40  ;;  %v1691_v31 = vmul.f32 %v3887_v29, %v1627_v46  ;;  %v3896_v37 = vld [vmem:[#allocation9_spill] sm:$0xff] (!%p2149_p8)  ;;  %v3897_v44 = vld [vmem:[#allocation10_spill] sm:$0xff] (!%p2149_p8) }
 0x2a9   : > { %v1566_v24 = vpop.permute.xlu1 %1565  ;;  %v1914_v0 = vsub.s32 %v1911_v54, %v3892_v25 }
 0x2aa   : > { %v1724_v17 = vadd.f32 %v1723_v19, %v1690_v22  ;;  %v1630_v13 = vmul.f32 %v1566_v24, %v1406_v38  ;;  %v1631_v55 = vmul.f32 %v1566_v24, %v1407_v20  ;;  %v1755_v48 = vadd.f32 %v1754_v63, %v1691_v31  ;;  %v1990_v24 = vld [vmem:[%s3770_s7] sm:$0x3] (!%p2149_p8) }
 0x2ac   : > { %v1725_v5 = vadd.f32 %v1724_v17, %v1692_v51  ;;  %v1694_v39 = vmul.f32 %v3890_v30, %v1630_v13  ;;  %v1695_v27 = vmul.f32 %v3891_v9, %v1631_v55  ;;  %v1756_v57 = vadd.f32 %v1755_v48, %v1693_v15  ;;  %v1992_v13 = vld [vmem:[%s3771_s8] sm:$0x3] (!%p2149_p8) }
 0x2ae   : > { %v1757_v2 = vadd.f32 %v1756_v57, %v1695_v27  ;;  %v1726_v34 = vadd.f32 %v1725_v5, %v1694_v39 }
 0x2b0   : > { %1886 = vmatprep.mubr.f32.mxu0 %v1757_v2 }
 0x2b1   : > { %1887 = vmatmul.mubr.f32.vlgmr.msra.gmra.mrb[0].mxu0 %v1726_v34 }
 0x384   : > { %v1888_v10 = vpop.f32.mrb[0].mxu0 }
 0x385   : > { %v1894_v56 = vrot.slane %v1888_v10, 4  ;;  %v1890_v7 = vpop.f32.mrb[1].mxu0 }
 0x386   : > { %v1900_v11 = vrot.slane %v1890_v7, 4 }
 0x387   : > { %v1895_v43 = vadd.f32 %v1894_v56, %v1888_v10 }
 0x388   : > { %v1901_v1 = vadd.f32 %v1900_v11, %v1890_v7 }
 0x389   : > { %v1896_v53 = vrot.slane %v1895_v43, 2 }
 0x38a   : > { %v1902_v12 = vrot.slane %v1901_v1, 2 }
 0x38b   : > { %v1897_v21 = vadd.f32 %v1896_v53, %v1895_v43 }
 0x38c   : > { %v1903_v36 = vadd.f32 %v1902_v12, %v1901_v1 }
 0x38d   : > { %v1898_v16 = vrot.slane %v1897_v21, 1 }
 0x38e   : > { %v1904_v26 = vrot.slane %v1903_v36, 1 }
 0x38f   : > { %v1899_v33 = vadd.f32 %v1898_v16, %v1897_v21 }
 0x390   : > { %v1905_v3 = vadd.f32 %v1904_v26, %v1903_v36 }
 0x392   : > { %v1908_v35 = vcombine.low %v1899_v33, %v1905_v3 }
 0x394   : > { %v1915_v45 = vrot.slane %v1908_v35, %v1914_v0  ;;  %1933 = sbr.rel (%p2149_p8) target bundleno = 1258 (0x4ea), region = 64 }
 0x396   : > { %v1922_v4 = vrot.slane %v1915_v45, %v1914_v0 }
 0x398   : > { %v1924_v47 = vadd.f32 %v1922_v4, %v1893_v41 }
 0x39a   : > { %1929 = vst.msk [vmem:[#allocation2] sm:$0x3] %vm3725_vm1, %v1924_v47 }
 0x3a1   : > { %v1935_v6 = vld [vmem:[#allocation2] sm:$0x3] }
 0x3a2   : > { %v1936_v59 = vadd.f32 %v1935_v6, %v1934_v60 }
 0x3a4   : > { %v1941_v52 = vrot.slane %v1936_v59, %v3896_v37  ;;  %v1945_v28 = vrot.slane %v1936_v59, %v3897_v44 }
 0x3a6   : > { %v1949_v62 = vsel %vm1948_vm2, %v1941_v52, 0.0  ;;  %v1950_v61 = vsel %vm1948_vm2, %v1945_v28, 0.0 }
 0x3a7   : > { %v1951_v58 = vadd.f32 %v1950_v61, %v1949_v62 }
 0x3a9   : > { %1952 = vadd.xlane.f32.xlu0 %v1951_v58 }
 0x436   : > { %v1953_v50 = vpop.xlane.xlu0 %1952 }
 0x437   : > { %v1955_v40 = vmul.f32 0.00390625, %v1953_v50 }
 0x439   : > { %v1960_v46 = vrot.slane %v1955_v40, %v3896_v37 }
 0x43b   : > { %v1962_v38 = vsub.f32 %v1936_v59, %v1960_v46 }
 0x43d   : > { %v1963_v20 = vmul.f32 %v1962_v38, %v1962_v38 }
 0x43f   : > { %v1968_v19 = vrot.slane %v1963_v20, %v3896_v37  ;;  %v1972_v63 = vrot.slane %v1963_v20, %v3897_v44 }
 0x441   : > { %v1975_v18 = vsel %vm1948_vm2, %v1968_v19, 0.0  ;;  %v1976_v22 = vsel %vm1948_vm2, %v1972_v63, 0.0 }
 0x442   : > { %v1977_v29 = vadd.f32 %v1976_v22, %v1975_v18 }
 0x444   : > { %1978 = vadd.xlane.f32.xlu0 %v1977_v29 }
 0x4d1   : > { %v1979_v31 = vpop.xlane.xlu0 %1978 }
 0x4d2   : > { %v1980_v49 = vmul.f32 0.00390625, %v1979_v31 }
 0x4d4   : > { %v1981_v51 = vadd.f32 1e-05, %v1980_v49 }
 0x4d6   : > { %2454 = vrsqrt.f32 %v1981_v51 }
 0x4e0   : > { %v2455_v8 = vpop.eup %2454 }
 0x4e1   : > { %v1987_v15 = vrot.slane %v2455_v8, %v3896_v37 }
 0x4e3   : > { %v1989_v17 = vmul.f32 %v1987_v15, %v1962_v38 }
 0x4e5   : > { %v1991_v55 = vmul.f32 %v1990_v24, %v1989_v17 }
 0x4e7   : > { %v1993_v48 = vadd.f32 %v1992_v13, %v1991_v55 }
 0x4e9   : > { %1994 = vst.msk [vmem:[%s2612_s28] sm:$0x3] %vm3725_vm1, %v1993_v48 }
 0x4ea PF: > { %s3898_s16 = sld [smem:[#allocation5_spill]]  ;;  %s3899_s30 = sld [smem:[#allocation3_spill]] }
 0x4eb   : > { %s3900_s10 = sld [smem:[#allocation4_spill]]  ;;  %s3901_s11 = sld [smem:[#allocation6_spill]] }
 0x4ec   : > { %s3902_s12 = sld [smem:[#allocation7_spill]] }
 0x4f0   : > { %s19_s13 = sadd.s32 1, %s3898_s16  }
 0x4f1   : > { %p16_p9 = scmp.ge.s32.totalorder %s19_s13, 18  }
 0x4f3   :  { %18 = sbr.rel (!%p16_p9) target bundleno = 3 (0x3), region = 106 }

</bundles_post_ra>
